<compile_context>
chip_gen: v5e
topology: v5e:2x2
jax: 0.10.0
libtpu: 0.0.40
codegen_flags: <defaults>
</compile_context>

<pallas_src>
import functools

import jax
import jax.numpy as jnp
from jax.experimental import pallas as pl
from jax.experimental.pallas import tpu as pltpu

EPS = 1e-5
IN_FEATURES = 784
IN_PADDED = 896       # 7 * 128 — lane-aligned K for the fc1 matmul
OUT_FEATURES = 10
OUT_PADDED = 128      # lane-dense logits tile


def _mlp_kernel(x_ref,
                w1_ref, g1_ref, be1_ref,
                w2_ref, g2_ref, be2_ref,
                w3_ref, g3_ref, be3_ref,
                w4_ref, b4_ref,
                out_ref, *, n_valid, masked):
    """Fused forward: 4 bf16 MXU matmuls + 3 folded (BN + ReLU) affines.

    fc1/fc2/fc3 biases are omitted: training-mode BN subtracts the batch mean,
    which cancels any per-feature constant bias exactly.
    """
    inv_n = 1.0 / float(n_valid)
    if masked:
        row = jax.lax.broadcasted_iota(jnp.int32, (x_ref.shape[0], 1), 0)
        rmask = (row < n_valid).astype(jnp.float32)           # (Bp, 1)

    def bn_relu(h, g_ref, be_ref):
        # BatchNorm1d (training mode, biased variance) folded into one affine;
        # d = h - mean is hoisted and reused for the variance.
        if masked:
            mean = jnp.sum(h * rmask, axis=0, keepdims=True) * inv_n
            d = h - mean
            var = jnp.sum(d * d * rmask, axis=0, keepdims=True) * inv_n
        else:
            mean = jnp.sum(h, axis=0, keepdims=True) * inv_n
            d = h - mean
            var = jnp.sum(d * d, axis=0, keepdims=True) * inv_n
        scale = g_ref[...] * jax.lax.rsqrt(var + EPS)          # rsqrt -> EUP slot
        y = jnp.maximum(d * scale + be_ref[...], 0.0)
        return y.astype(jnp.bfloat16)                          # bf16 for next matmul

    h = bn_relu(jnp.dot(x_ref[...], w1_ref[...], preferred_element_type=jnp.float32),
                g1_ref, be1_ref)
    h = bn_relu(jnp.dot(h, w2_ref[...], preferred_element_type=jnp.float32),
                g2_ref, be2_ref)
    h = bn_relu(jnp.dot(h, w3_ref[...], preferred_element_type=jnp.float32),
                g3_ref, be3_ref)
    out_ref[...] = (jnp.dot(h, w4_ref[...], preferred_element_type=jnp.float32)
                    + b4_ref[...]).astype(out_ref.dtype)


def prepare_params(params):
    """One-time param prep: pad + cast weights to MXU-friendly bf16 layouts.

    Call once; pass the result to net_forward on every step so the per-call
    HBM traffic is only the already-padded bf16 weights (~1.3 MB).
    """
    (w1, b1, g1, be1, w2, b2, g2, be2, w3, b3, g3, be3, w4, b4) = params
    del b1, b2, b3  # mathematically cancelled by training-mode BN mean subtraction

    w1_p = (jnp.zeros((IN_PADDED, 512), jnp.bfloat16)
            .at[:IN_FEATURES, :].set(w1.astype(jnp.bfloat16)))
    w4_p = (jnp.zeros((128, OUT_PADDED), jnp.bfloat16)
            .at[:, :OUT_FEATURES].set(w4.astype(jnp.bfloat16)))
    b4_p = jnp.zeros((1, OUT_PADDED), jnp.float32).at[:, :OUT_FEATURES].set(b4)

    return (w1_p, g1, be1,
            w2.astype(jnp.bfloat16), g2, be2,
            w3.astype(jnp.bfloat16), g3, be3,
            w4_p, b4_p)


def net_forward(x, prepped_params, epoch=0):
    """Flatten NCHW input, pad to MXU-friendly shapes, run the fused Pallas MLP.

    `epoch` is accepted to mirror the PyTorch signature but (as in the reference
    forward) does not affect the computation. `prepped_params` must come from
    prepare_params().
    """
    del epoch
    b = x.shape[0]
    x2d = x.reshape(b, -1)
    assert x2d.shape[1] == IN_FEATURES

    # Pad batch to a multiple of 16 (bf16 sublane packing); padded rows are
    # masked out of the BN statistics in-kernel.
    b_pad = max(16, ((b + 15) // 16) * 16)
    masked = b_pad != b

    # Build the lane-padded (784 -> 896) input directly in bf16 — no f32
    # padded intermediate.
    x_bf = (jnp.zeros((b_pad, IN_PADDED), jnp.bfloat16)
            .at[:b, :IN_FEATURES].set(x2d.astype(jnp.bfloat16)))

    flat_args = (x_bf,) + tuple(prepped_params)

    vmem_spec = pl.BlockSpec(memory_space=pltpu.MemorySpace.VMEM)
    kernel = functools.partial(_mlp_kernel, n_valid=b, masked=masked)

    out = pl.pallas_call(
        kernel,
        out_shape=jax.ShapeDtypeStruct((b_pad, OUT_PADDED), jnp.float32),
        in_specs=[vmem_spec] * len(flat_args),
        out_specs=vmem_spec,
    )(*flat_args)
    return out[:b, :OUT_FEATURES]


def init_params(key):
    """Deterministic parameter init matching the module's shapes.

    Linear weights stored transposed: (in_features, out_features).
    BatchNorm: gamma=1, beta=0 (PyTorch default init).
    """
    dims = [(784, 512), (512, 256), (256, 128), (128, 10)]
    keys = jax.random.split(key, len(dims) * 2)
    params = []
    for i, (fan_in, fan_out) in enumerate(dims):
        kw, kb = keys[2 * i], keys[2 * i + 1]
        bound = 1.0 / jnp.sqrt(float(fan_in))
        w = jax.random.uniform(kw, (fan_in, fan_out), jnp.float32, -bound, bound)
        bias = jax.random.uniform(kb, (1, fan_out), jnp.float32, -bound, bound)
        params.append(w)
        params.append(bias)
        if i < 3:  # BatchNorm affine params for fc1/fc2/fc3
            params.append(jnp.ones((1, fan_out), jnp.float32))    # gamma
            params.append(jnp.zeros((1, fan_out), jnp.float32))   # beta
    return params


def _reference_forward(x, params):
    """Pure-JAX f32 reference (training-mode BN, biases included)."""
    (w1, b1, g1, be1, w2, b2, g2, be2, w3, b3, g3, be3, w4, b4) = params
    h = x.reshape(x.shape[0], -1).astype(jnp.float32)

    def block(h, w, b, g, be):
        h = h @ w + b
        mean = jnp.mean(h, axis=0, keepdims=True)
        var = jnp.mean((h - mean) ** 2, axis=0, keepdims=True)
        h = (h - mean) * jax.lax.rsqrt(var + EPS) * g + be
        return jnp.maximum(h, 0.0)

    h = block(h, w1, b1, g1, be1)
    h = block(h, w2, b2, g2, be2)
    h = block(h, w3, b3, g3, be3)
    return h @ w4 + b4


if __name__ == "__main__":
    key = jax.random.PRNGKey(0)
    k_x, k_p = jax.random.split(key)

    # Small MNIST-shaped NCHW test batch (multiple of 16 -> no row masking path),
    # fully VMEM-resident on every TPU generation.
    batch = 16
    x = jax.random.normal(k_x, (batch, 1, 28, 28), dtype=jnp.float32)
    params = init_params(k_p)

    prepped = prepare_params(params)          # one-time pad + bf16 cast
    fwd = jax.jit(net_forward)

    out = jax.block_until_ready(fwd(x, prepped))
    assert out.shape == (batch, OUT_FEATURES) and out.dtype == jnp.float32
    assert bool(jnp.all(jnp.isfinite(out)))

    # Loose check vs. an f32 reference (kernel uses bf16 matmul operands; fc1-3
    # biases are dropped in-kernel because training-mode BN cancels them exactly).
    ref = _reference_forward(x, params)
    max_err = float(jnp.max(jnp.abs(out - ref)))
    assert max_err < 1e-1, f"max abs err too large: {max_err}"

    print("KERNEL_OK")
</pallas_src>

<mosaic_0001>
module attributes {stable_mosaic.version = 11 : i64} {
  func.func @_mlp_kernel(%arg0: memref<16x896xbf16, #tpu.memory_space<vmem>>, %arg1: memref<896x512xbf16, #tpu.memory_space<vmem>>, %arg2: memref<1x512xf32, #tpu.memory_space<vmem>>, %arg3: memref<1x512xf32, #tpu.memory_space<vmem>>, %arg4: memref<512x256xbf16, #tpu.memory_space<vmem>>, %arg5: memref<1x256xf32, #tpu.memory_space<vmem>>, %arg6: memref<1x256xf32, #tpu.memory_space<vmem>>, %arg7: memref<256x128xbf16, #tpu.memory_space<vmem>>, %arg8: memref<1x128xf32, #tpu.memory_space<vmem>>, %arg9: memref<1x128xf32, #tpu.memory_space<vmem>>, %arg10: memref<128x128xbf16, #tpu.memory_space<vmem>>, %arg11: memref<1x128xf32, #tpu.memory_space<vmem>>, %arg12: memref<16x128xf32, #tpu.memory_space<vmem>>) attributes {dimension_semantics = [], scalar_prefetch = 0 : i64, scratch_operands = 0 : i64, tpu.core_type = #tpu.core_type<tc>} {
    %c0 = arith.constant 0 : index
    %c0_0 = arith.constant 0 : index
    %0 = vector.load %arg0[%c0, %c0_0] : memref<16x896xbf16, #tpu.memory_space<vmem>>, vector<16x896xbf16>
    %c0_1 = arith.constant 0 : index
    %c0_2 = arith.constant 0 : index
    %1 = vector.load %arg1[%c0_1, %c0_2] : memref<896x512xbf16, #tpu.memory_space<vmem>>, vector<896x512xbf16>
    %cst = arith.constant dense<0.000000e+00> : vector<16x512xf32>
    %2 = tpu.matmul %0, %1, %cst {dimension_numbers = #tpu.dot_dimension_numbers<[1], [0], [0], [1], [0, 0, 1, 1], [], []>} : vector<16x896xbf16>, vector<896x512xbf16>, vector<16x512xf32> -> vector<16x512xf32>
    %cst_3 = arith.constant dense<0.000000e+00> : vector<512xf32>
    %3 = vector.multi_reduction <add>, %2, %cst_3 [0] : vector<16x512xf32> to vector<512xf32>
    %4 = vector.shape_cast %3 : vector<512xf32> to vector<1x512xf32>
    %cst_4 = arith.constant 6.250000e-02 : f32
    %5 = vector.broadcast %cst_4 : f32 to vector<1x512xf32>
    %6 = arith.mulf %4, %5 : vector<1x512xf32>
    %7 = vector.broadcast %6 : vector<1x512xf32> to vector<16x512xf32>
    %8 = arith.subf %2, %7 : vector<16x512xf32>
    %9 = arith.mulf %8, %8 : vector<16x512xf32>
    %cst_5 = arith.constant dense<0.000000e+00> : vector<512xf32>
    %10 = vector.multi_reduction <add>, %9, %cst_5 [0] : vector<16x512xf32> to vector<512xf32>
    %11 = vector.shape_cast %10 : vector<512xf32> to vector<1x512xf32>
    %cst_6 = arith.constant 6.250000e-02 : f32
    %12 = vector.broadcast %cst_6 : f32 to vector<1x512xf32>
    %13 = arith.mulf %11, %12 : vector<1x512xf32>
    %c0_7 = arith.constant 0 : index
    %c0_8 = arith.constant 0 : index
    %14 = vector.load %arg2[%c0_7, %c0_8] : memref<1x512xf32, #tpu.memory_space<vmem>>, vector<1x512xf32>
    %cst_9 = arith.constant 9.99999974E-6 : f32
    %15 = vector.broadcast %cst_9 : f32 to vector<1x512xf32>
    %16 = arith.addf %13, %15 : vector<1x512xf32>
    %17 = math.rsqrt %16 : vector<1x512xf32>
    %18 = arith.mulf %14, %17 : vector<1x512xf32>
    %19 = vector.broadcast %18 : vector<1x512xf32> to vector<16x512xf32>
    %20 = arith.mulf %8, %19 : vector<16x512xf32>
    %c0_10 = arith.constant 0 : index
    %c0_11 = arith.constant 0 : index
    %21 = vector.load %arg3[%c0_10, %c0_11] : memref<1x512xf32, #tpu.memory_space<vmem>>, vector<1x512xf32>
    %22 = vector.broadcast %21 : vector<1x512xf32> to vector<16x512xf32>
    %23 = arith.addf %20, %22 : vector<16x512xf32>
    %cst_12 = arith.constant 0.000000e+00 : f32
    %24 = vector.broadcast %cst_12 : f32 to vector<16x512xf32>
    %25 = arith.maximumf %23, %24 : vector<16x512xf32>
    %26 = arith.truncf %25 : vector<16x512xf32> to vector<16x512xbf16>
    %c0_13 = arith.constant 0 : index
    %c0_14 = arith.constant 0 : index
    %27 = vector.load %arg4[%c0_13, %c0_14] : memref<512x256xbf16, #tpu.memory_space<vmem>>, vector<512x256xbf16>
    %cst_15 = arith.constant dense<0.000000e+00> : vector<16x256xf32>
    %28 = tpu.matmul %26, %27, %cst_15 {dimension_numbers = #tpu.dot_dimension_numbers<[1], [0], [0], [1], [0, 0, 1, 1], [], []>} : vector<16x512xbf16>, vector<512x256xbf16>, vector<16x256xf32> -> vector<16x256xf32>
    %cst_16 = arith.constant dense<0.000000e+00> : vector<256xf32>
    %29 = vector.multi_reduction <add>, %28, %cst_16 [0] : vector<16x256xf32> to vector<256xf32>
    %30 = vector.shape_cast %29 : vector<256xf32> to vector<1x256xf32>
    %cst_17 = arith.constant 6.250000e-02 : f32
    %31 = vector.broadcast %cst_17 : f32 to vector<1x256xf32>
    %32 = arith.mulf %30, %31 : vector<1x256xf32>
    %33 = vector.broadcast %32 : vector<1x256xf32> to vector<16x256xf32>
    %34 = arith.subf %28, %33 : vector<16x256xf32>
    %35 = arith.mulf %34, %34 : vector<16x256xf32>
    %cst_18 = arith.constant dense<0.000000e+00> : vector<256xf32>
    %36 = vector.multi_reduction <add>, %35, %cst_18 [0] : vector<16x256xf32> to vector<256xf32>
    %37 = vector.shape_cast %36 : vector<256xf32> to vector<1x256xf32>
    %cst_19 = arith.constant 6.250000e-02 : f32
    %38 = vector.broadcast %cst_19 : f32 to vector<1x256xf32>
    %39 = arith.mulf %37, %38 : vector<1x256xf32>
    %c0_20 = arith.constant 0 : index
    %c0_21 = arith.constant 0 : index
    %40 = vector.load %arg5[%c0_20, %c0_21] : memref<1x256xf32, #tpu.memory_space<vmem>>, vector<1x256xf32>
    %cst_22 = arith.constant 9.99999974E-6 : f32
    %41 = vector.broadcast %cst_22 : f32 to vector<1x256xf32>
    %42 = arith.addf %39, %41 : vector<1x256xf32>
    %43 = math.rsqrt %42 : vector<1x256xf32>
    %44 = arith.mulf %40, %43 : vector<1x256xf32>
    %45 = vector.broadcast %44 : vector<1x256xf32> to vector<16x256xf32>
    %46 = arith.mulf %34, %45 : vector<16x256xf32>
    %c0_23 = arith.constant 0 : index
    %c0_24 = arith.constant 0 : index
    %47 = vector.load %arg6[%c0_23, %c0_24] : memref<1x256xf32, #tpu.memory_space<vmem>>, vector<1x256xf32>
    %48 = vector.broadcast %47 : vector<1x256xf32> to vector<16x256xf32>
    %49 = arith.addf %46, %48 : vector<16x256xf32>
    %cst_25 = arith.constant 0.000000e+00 : f32
    %50 = vector.broadcast %cst_25 : f32 to vector<16x256xf32>
    %51 = arith.maximumf %49, %50 : vector<16x256xf32>
    %52 = arith.truncf %51 : vector<16x256xf32> to vector<16x256xbf16>
    %c0_26 = arith.constant 0 : index
    %c0_27 = arith.constant 0 : index
    %53 = vector.load %arg7[%c0_26, %c0_27] : memref<256x128xbf16, #tpu.memory_space<vmem>>, vector<256x128xbf16>
    %cst_28 = arith.constant dense<0.000000e+00> : vector<16x128xf32>
    %54 = tpu.matmul %52, %53, %cst_28 {dimension_numbers = #tpu.dot_dimension_numbers<[1], [0], [0], [1], [0, 0, 1, 1], [], []>} : vector<16x256xbf16>, vector<256x128xbf16>, vector<16x128xf32> -> vector<16x128xf32>
    %cst_29 = arith.constant dense<0.000000e+00> : vector<128xf32>
    %55 = vector.multi_reduction <add>, %54, %cst_29 [0] : vector<16x128xf32> to vector<128xf32>
    %56 = vector.shape_cast %55 : vector<128xf32> to vector<1x128xf32>
    %cst_30 = arith.constant 6.250000e-02 : f32
    %57 = vector.broadcast %cst_30 : f32 to vector<1x128xf32>
    %58 = arith.mulf %56, %57 : vector<1x128xf32>
    %59 = vector.broadcast %58 : vector<1x128xf32> to vector<16x128xf32>
    %60 = arith.subf %54, %59 : vector<16x128xf32>
    %61 = arith.mulf %60, %60 : vector<16x128xf32>
    %cst_31 = arith.constant dense<0.000000e+00> : vector<128xf32>
    %62 = vector.multi_reduction <add>, %61, %cst_31 [0] : vector<16x128xf32> to vector<128xf32>
    %63 = vector.shape_cast %62 : vector<128xf32> to vector<1x128xf32>
    %cst_32 = arith.constant 6.250000e-02 : f32
    %64 = vector.broadcast %cst_32 : f32 to vector<1x128xf32>
    %65 = arith.mulf %63, %64 : vector<1x128xf32>
    %c0_33 = arith.constant 0 : index
    %c0_34 = arith.constant 0 : index
    %66 = vector.load %arg8[%c0_33, %c0_34] : memref<1x128xf32, #tpu.memory_space<vmem>>, vector<1x128xf32>
    %cst_35 = arith.constant 9.99999974E-6 : f32
    %67 = vector.broadcast %cst_35 : f32 to vector<1x128xf32>
    %68 = arith.addf %65, %67 : vector<1x128xf32>
    %69 = math.rsqrt %68 : vector<1x128xf32>
    %70 = arith.mulf %66, %69 : vector<1x128xf32>
    %71 = vector.broadcast %70 : vector<1x128xf32> to vector<16x128xf32>
    %72 = arith.mulf %60, %71 : vector<16x128xf32>
    %c0_36 = arith.constant 0 : index
    %c0_37 = arith.constant 0 : index
    %73 = vector.load %arg9[%c0_36, %c0_37] : memref<1x128xf32, #tpu.memory_space<vmem>>, vector<1x128xf32>
    %74 = vector.broadcast %73 : vector<1x128xf32> to vector<16x128xf32>
    %75 = arith.addf %72, %74 : vector<16x128xf32>
    %cst_38 = arith.constant 0.000000e+00 : f32
    %76 = vector.broadcast %cst_38 : f32 to vector<16x128xf32>
    %77 = arith.maximumf %75, %76 : vector<16x128xf32>
    %78 = arith.truncf %77 : vector<16x128xf32> to vector<16x128xbf16>
    %c0_39 = arith.constant 0 : index
    %c0_40 = arith.constant 0 : index
    %79 = vector.load %arg10[%c0_39, %c0_40] : memref<128x128xbf16, #tpu.memory_space<vmem>>, vector<128x128xbf16>
    %cst_41 = arith.constant dense<0.000000e+00> : vector<16x128xf32>
    %80 = tpu.matmul %78, %79, %cst_41 {dimension_numbers = #tpu.dot_dimension_numbers<[1], [0], [0], [1], [0, 0, 1, 1], [], []>} : vector<16x128xbf16>, vector<128x128xbf16>, vector<16x128xf32> -> vector<16x128xf32>
    %c0_42 = arith.constant 0 : index
    %c0_43 = arith.constant 0 : index
    %81 = vector.load %arg11[%c0_42, %c0_43] : memref<1x128xf32, #tpu.memory_space<vmem>>, vector<1x128xf32>
    %82 = vector.broadcast %81 : vector<1x128xf32> to vector<16x128xf32>
    %83 = arith.addf %80, %82 : vector<16x128xf32>
    %c0_44 = arith.constant 0 : index
    %c0_45 = arith.constant 0 : index
    %84 = vector.load %arg12[%c0_44, %c0_45] : memref<16x128xf32, #tpu.memory_space<vmem>>, vector<16x128xf32>
    tpu.vector_store %arg12[%c0_44, %c0_45], %83 {strides = array<i32>} : memref<16x128xf32, #tpu.memory_space<vmem>>, vector<16x128xf32>,
    return
  }
}

</mosaic_0001>

<bundles_post_ra>
// kernel: net_forward.1
= control target key start
LH: loop header
LB: loop body
LE: loop exit
PB: predicated region body
PF: predicated region fallthrough
CT: control target
= control target key end

     0   :  { %17 = vsyncpa [#allocation3], 0  ;;  %s5337_s0 = inlined_call_operand.vmem [shape: bf16[16,896], index: 0, kind: input, shape index: {}]   ;;  %s5338_s1 = inlined_call_operand.hbm [shape: bf16[896,512], index: 1, kind: input, shape index: {}]   ;;  %s5339_s2 = inlined_call_operand.vmem [shape: f32[1,512], index: 2, kind: input, shape index: {}]   ;;  %s5340_s3 = inlined_call_operand.vmem [shape: f32[1,512], index: 3, kind: input, shape index: {}]   ;;  %s5341_s4 = inlined_call_operand.vmem [shape: bf16[512,256], index: 4, kind: input, shape index: {}]   ;;  %s5342_s5 = inlined_call_operand.vmem [shape: f32[1,256], index: 5, kind: input, shape index: {}]   ;;  %s5343_s6 = inlined_call_operand.vmem [shape: f32[1,256], index: 6, kind: input, shape index: {}]   ;;  %s5344_s7 = inlined_call_operand.vmem [shape: bf16[256,128], index: 7, kind: input, shape index: {}]   ;;  %s5345_s8 = inlined_call_operand.vmem [shape: f32[1,128], index: 8, kind: input, shape index: {}]   ;;  %s5346_s9 = inlined_call_operand.vmem [shape: f32[1,128], index: 9, kind: input, shape index: {}]   ;;  %s5347_s10 = inlined_call_operand.vmem [shape: bf16[128,128], index: 10, kind: input, shape index: {}]   ;;  %s5348_s11 = inlined_call_operand.vmem [shape: f32[1,128], index: 11, kind: input, shape index: {}]   ;;  %s5349_s12 = inlined_call_operand.hbm [shape: f32[16,128], index: 12, kind: output, shape index: {}]  }
   0x1   :  { %18 = vsyncpa [#allocation4], 0  ;;  %s25_s23 = sshll.u32 %s5338_s1, 4  ;;  %s4590_s24 = smov [#allocation2]   ;;  %s26_s23 = int_to_ptr.hbm [resolvable:$true] %s25_s23 }
   0x2   :  { %s27_s25 = sshll.u32 %s4590_s24, 4  ;;  %s4591_s26 = smov 256   ;;  %s28_s25 = int_to_ptr.vmem [resolvable:$true] %s27_s25 }
   0x3   :  { %s4592_s27 = smov 16  }
   0x4   :  { %33 = dma.hbm_to_vmem [thread:$0]  %s26_s23, 28672, %s28_s25, [#allocation3], %s4591_s26, %s4591_s26, %s4592_s27  }
   0x5   :  { %4586 = dma.done.wait [#allocation3], 28672  }
   0x6   :  { %4587 = vsyncadd [#allocation3], 4294938624  ;;  %v3063_v0 = vld [vmem:[#allocation2 + $0xe0] sm:$0xf]  ;;  %v4234_v1 = vld [vmem:[#allocation2 + $0xec] sm:$0xf0] }
   0x7   :  { %v3191_v2 = vld [vmem:[#allocation2 + $0x1e0] sm:$0xf]  ;;  %v3064_v3 = vor.u32 %v4234_v1, %v3063_v0  ;;  %v4266_v4 = vld [vmem:[#allocation2 + $0x1ec] sm:$0xf0]  ;;  %vm1970_vm5 = vcmask 1040384   ;;  %vm1972_vm13 = vcmask 1042434  }
   0x8   :  { %v3319_v5 = vld [vmem:[#allocation2 + $0x2e0] sm:$0xf]  ;;  %v4298_v6 = vld [vmem:[#allocation2 + $0x2ec] sm:$0xf0]  ;;  %v3192_v7 = vor.u32 %v4266_v4, %v3191_v2  ;;  %vm1974_vm14 = vcmask 1041408   ;;  %s4593_s21 = smov [#allocation5]  }
   0x9   :  { %v3320_v8 = vor.u32 %v4298_v6, %v3319_v5  ;;  %v3447_v9 = vld [vmem:[#allocation2 + $0x3e0] sm:$0xf]  ;;  %v4330_v10 = vld [vmem:[#allocation2 + $0x3ec] sm:$0xf0]  ;;  %1446 = vmatpush.bf16.msra.mxu0 %v3064_v3  ;;  %s2906_s22 = sshll.u32 %s4593_s21, 4  ;;  %s4594_s24 = smov 128   ;;  %s2907_s22 = int_to_ptr.vmem [resolvable:$true] %s2906_s22 }
   0xa   :  { %v3047_v11 = vld [vmem:[#allocation2 + $0xc0] sm:$0xf]  ;;  %v3448_v12 = vor.u32 %v4330_v10, %v3447_v9  ;;  %v4230_v13 = vld [vmem:[#allocation2 + $0xcc] sm:$0xf0]  ;;  %1460 = vmatpush.bf16.msra.mxu1 %v3192_v7  ;;  %s4595_s25 = smov 8  }
   0xb   :  { %v3175_v14 = vld [vmem:[#allocation2 + $0x1c0] sm:$0xf]  ;;  %v4262_v15 = vld [vmem:[#allocation2 + $0x1cc] sm:$0xf0]  ;;  %1474 = vmatpush.bf16.msra.mxu2 %v3320_v8  ;;  %v3048_v16 = vor.u32 %v4230_v13, %v3047_v11 }
   0xc   :  { %v3176_v17 = vor.u32 %v4262_v15, %v3175_v14  ;;  %v3303_v18 = vld [vmem:[#allocation2 + $0x2c0] sm:$0xf]  ;;  %v4294_v19 = vld [vmem:[#allocation2 + $0x2cc] sm:$0xf0]  ;;  %1488 = vmatpush.bf16.msra.mxu3 %v3448_v12 }
   0xd   :  { %v3431_v20 = vld [vmem:[#allocation2 + $0x3c0] sm:$0xf]  ;;  %v3304_v21 = vor.u32 %v4294_v19, %v3303_v18  ;;  %v4326_v22 = vld [vmem:[#allocation2 + $0x3cc] sm:$0xf0]  ;;  %1447 = vmatpush.bf16.msra.mxu0 %v3048_v16 }
   0xe   :  { %v3031_v23 = vld [vmem:[#allocation2 + $0xa0] sm:$0xf]  ;;  %v4226_v24 = vld [vmem:[#allocation2 + $0xac] sm:$0xf0]  ;;  %v3432_v25 = vor.u32 %v4326_v22, %v3431_v20  ;;  %1461 = vmatpush.bf16.msra.mxu1 %v3176_v17 }
   0xf   :  { %v3159_v26 = vld [vmem:[#allocation2 + $0x1a0] sm:$0xf]  ;;  %v4258_v27 = vld [vmem:[#allocation2 + $0x1ac] sm:$0xf0]  ;;  %v3032_v29 = vor.u32 %v4226_v24, %v3031_v23  ;;  %1475 = vmatpush.bf16.msra.mxu2 %v3304_v21 }
  0x10   :  { %v3287_v28 = vld [vmem:[#allocation2 + $0x2a0] sm:$0xf]  ;;  %v4290_v30 = vld [vmem:[#allocation2 + $0x2ac] sm:$0xf0]  ;;  %v3160_v33 = vor.u32 %v4258_v27, %v3159_v26  ;;  %1489 = vmatpush.bf16.msra.mxu3 %v3432_v25 }
  0x11   :  { %v3415_v31 = vld [vmem:[#allocation2 + $0x3a0] sm:$0xf]  ;;  %v4322_v32 = vld [vmem:[#allocation2 + $0x3ac] sm:$0xf0]  ;;  %v3288_v34 = vor.u32 %v4290_v30, %v3287_v28  ;;  %1448 = vmatpush.bf16.msra.mxu0 %v3032_v29 }
  0x12   :  { %v3015_v35 = vld [vmem:[#allocation2 + $0x80] sm:$0xf]  ;;  %v4222_v36 = vld [vmem:[#allocation2 + $0x8c] sm:$0xf0]  ;;  %v3416_v38 = vor.u32 %v4322_v32, %v3415_v31  ;;  %1462 = vmatpush.bf16.msra.mxu1 %v3160_v33 }
  0x13   :  { %v3143_v37 = vld [vmem:[#allocation2 + $0x180] sm:$0xf]  ;;  %v4254_v39 = vld [vmem:[#allocation2 + $0x18c] sm:$0xf0]  ;;  %v3016_v44 = vor.u32 %v4222_v36, %v3015_v35  ;;  %1476 = vmatpush.bf16.msra.mxu2 %v3288_v34 }
  0x14   :  { %v3271_v40 = vld [vmem:[#allocation2 + $0x280] sm:$0xf]  ;;  %v4286_v41 = vld [vmem:[#allocation2 + $0x28c] sm:$0xf0]  ;;  %v3144_v45 = vor.u32 %v4254_v39, %v3143_v37  ;;  %1490 = vmatpush.bf16.msra.mxu3 %v3416_v38  ;;  %v4232_v37 = vld [vmem:[#allocation2 + $0xe4] sm:$0xf] }
  0x15   :  { %v3399_v42 = vld [vmem:[#allocation2 + $0x380] sm:$0xf]  ;;  %v4318_v43 = vld [vmem:[#allocation2 + $0x38c] sm:$0xf0]  ;;  %v3272_v46 = vor.u32 %v4286_v41, %v3271_v40  ;;  %1449 = vmatpush.bf16.msra.mxu0 %v3016_v44  ;;  %v3065_v38 = vld [vmem:[#allocation2 + $0xf0] sm:$0xf0] }
  0x16   :  { %v2999_v47 = vld [vmem:[#allocation2 + $0x60] sm:$0xf]  ;;  %v4218_v48 = vld [vmem:[#allocation2 + $0x6c] sm:$0xf0]  ;;  %v3400_v50 = vor.u32 %v4318_v43, %v3399_v42  ;;  %1463 = vmatpush.bf16.msra.mxu1 %v3144_v45 }
  0x17   :  { %v3127_v49 = vld [vmem:[#allocation2 + $0x160] sm:$0xf]  ;;  %v4250_v51 = vld [vmem:[#allocation2 + $0x16c] sm:$0xf0]  ;;  %v3000_v56 = vor.u32 %v4218_v48, %v2999_v47  ;;  %1477 = vmatpush.bf16.msra.mxu2 %v3272_v46  ;;  %v3068_v48 = vor.u32 %v4232_v37, %v3065_v38 }
  0x18   :  { %v3255_v52 = vld [vmem:[#allocation2 + $0x260] sm:$0xf]  ;;  %v4282_v53 = vld [vmem:[#allocation2 + $0x26c] sm:$0xf0]  ;;  %v3128_v57 = vor.u32 %v4250_v51, %v3127_v49  ;;  %1491 = vmatpush.bf16.msra.mxu3 %v3400_v50  ;;  %v4228_v50 = vld [vmem:[#allocation2 + $0xc4] sm:$0xf] }
  0x19   :  { %v3383_v54 = vld [vmem:[#allocation2 + $0x360] sm:$0xf]  ;;  %v4314_v55 = vld [vmem:[#allocation2 + $0x36c] sm:$0xf0]  ;;  %v3256_v58 = vor.u32 %v4282_v53, %v3255_v52  ;;  %1450 = vmatpush.bf16.msra.mxu0 %v3000_v56  ;;  %v3049_v51 = vld [vmem:[#allocation2 + $0xd0] sm:$0xf0] }
  0x1a   :  { %v2983_v59 = vld [vmem:[#allocation2 + $0x40] sm:$0xf]  ;;  %v4214_v60 = vld [vmem:[#allocation2 + $0x4c] sm:$0xf0]  ;;  %v3384_v62 = vor.u32 %v4314_v55, %v3383_v54  ;;  %1464 = vmatpush.bf16.msra.mxu1 %v3128_v57  ;;  %v4200_v53 = vld [vmem:[%s5337_s0 + $0x18] sm:$0xf0] }
  0x1b   :  { %v3111_v61 = vld [vmem:[#allocation2 + $0x140] sm:$0xf]  ;;  %v4246_v63 = vld [vmem:[#allocation2 + $0x14c] sm:$0xf0]  ;;  %v2984_v4 = vor.u32 %v4214_v60, %v2983_v59  ;;  %1478 = vmatpush.bf16.msra.mxu2 %v3256_v58  ;;  %v2931_v54 = vld [vmem:[%s5337_s0 + $0x8] sm:$0xf] }
  0x1c   :  { %v3239_v0 = vld [vmem:[#allocation2 + $0x240] sm:$0xf]  ;;  %v4278_v1 = vld [vmem:[#allocation2 + $0x24c] sm:$0xf0]  ;;  %v3112_v5 = vor.u32 %v4246_v63, %v3111_v61  ;;  %1492 = vmatpush.bf16.msra.mxu3 %v3384_v62  ;;  %v4201_v58 = vld [vmem:[%s5337_s0 + $0x20] sm:$0xf0] }
  0x1d   :  { %v3367_v2 = vld [vmem:[#allocation2 + $0x340] sm:$0xf]  ;;  %v4310_v3 = vld [vmem:[#allocation2 + $0x34c] sm:$0xf0]  ;;  %v3240_v6 = vor.u32 %v4278_v1, %v3239_v0  ;;  %1451 = vmatpush.bf16.msra.mxu0 %v2984_v4  ;;  %v4678_v0 = vor.u32 %v4201_v58, %v2931_v54  ;;  %v3052_v1 = vor.u32 %v4228_v50, %v3049_v51  ;;  %v4224_v4 = vld [vmem:[#allocation2 + $0xa4] sm:$0xf] }
  0x1e   :  { %v2967_v7 = vld [vmem:[#allocation2 + $0x20] sm:$0xf]  ;;  %v4210_v8 = vld [vmem:[#allocation2 + $0x2c] sm:$0xf0]  ;;  %v3368_v10 = vor.u32 %v4310_v3, %v3367_v2  ;;  %1465 = vmatpush.bf16.msra.mxu1 %v3112_v5  ;;  %v3033_v5 = vld [vmem:[#allocation2 + $0xb0] sm:$0xf0] }
  0x1f   :  { %v3095_v9 = vld [vmem:[#allocation2 + $0x120] sm:$0xf]  ;;  %v4242_v11 = vld [vmem:[#allocation2 + $0x12c] sm:$0xf0]  ;;  %v2968_v16 = vor.u32 %v4210_v8, %v2967_v7  ;;  %1479 = vmatpush.bf16.msra.mxu2 %v3240_v6  ;;  %v4197_v6 = vld [vmem:[%s5337_s0 + $0x4] sm:$0xf] }
  0x20   :  { %v3223_v12 = vld [vmem:[#allocation2 + $0x220] sm:$0xf]  ;;  %v4274_v13 = vld [vmem:[#allocation2 + $0x22c] sm:$0xf0]  ;;  %v3096_v19 = vor.u32 %v4242_v11, %v3095_v9  ;;  %1493 = vmatpush.bf16.msra.mxu3 %v3368_v10 }
  0x21   :  { %v3351_v14 = vld [vmem:[#allocation2 + $0x320] sm:$0xf]  ;;  %v4306_v15 = vld [vmem:[#allocation2 + $0x32c] sm:$0xf0]  ;;  %v3224_v20 = vor.u32 %v4274_v13, %v3223_v12  ;;  %1452 = vmatpush.bf16.msra.mxu0 %v2968_v16 }
  0x22   :  { %v2951_v17 = vld [vmem:[#allocation2] sm:$0xf]  ;;  %v4206_v18 = vld [vmem:[#allocation2 + $0xc] sm:$0xf0]  ;;  %v3352_v24 = vor.u32 %v4306_v15, %v3351_v14  ;;  %1466 = vmatpush.bf16.msra.mxu1 %v3096_v19  ;;  %v4198_v19 = vld [vmem:[%s5337_s0 + $0xc] sm:$0xf] }
  0x23   :  { %v3079_v21 = vld [vmem:[#allocation2 + $0x100] sm:$0xf]  ;;  %v4238_v22 = vld [vmem:[#allocation2 + $0x10c] sm:$0xf0]  ;;  %v2952_v31 = vor.u32 %v4206_v18, %v2951_v17  ;;  %1480 = vmatpush.bf16.msra.mxu2 %v3224_v20  ;;  %v3036_v17 = vor.u32 %v4224_v4, %v3033_v5  ;;  %v2933_v20 = vld [vmem:[%s5337_s0 + $0x24] sm:$0xf0] }
  0x24   :  { %v3207_v23 = vld [vmem:[#allocation2 + $0x200] sm:$0xf]  ;;  %v4270_v25 = vld [vmem:[#allocation2 + $0x20c] sm:$0xf0]  ;;  %v3080_v35 = vor.u32 %v4238_v22, %v3079_v21  ;;  %1494 = vmatpush.bf16.msra.mxu3 %v3352_v24  ;;  %v4220_v21 = vld [vmem:[#allocation2 + $0x84] sm:$0xf] }
  0x25   :  { %v3335_v26 = vld [vmem:[#allocation2 + $0x300] sm:$0xf]  ;;  %v4302_v27 = vld [vmem:[#allocation2 + $0x30c] sm:$0xf0]  ;;  %v3208_v36 = vor.u32 %v4270_v25, %v3207_v23  ;;  %1453 = vmatpush.bf16.msra.mxu0 %v2952_v31  ;;  %v3017_v22 = vld [vmem:[#allocation2 + $0x90] sm:$0xf0]  ;;  %v4697_v23 = vor.u32 %v4198_v19, %v2933_v20 }
  0x26   :  { %v3575_v28 = vld [vmem:[#allocation2 + $0x4e0] sm:$0xf]  ;;  %v4362_v29 = vld [vmem:[#allocation2 + $0x4ec] sm:$0xf0]  ;;  %v3336_v39 = vor.u32 %v4302_v27, %v3335_v26  ;;  %1467 = vmatpush.bf16.msra.mxu1 %v3080_v35  ;;  %v3001_v35 = vld [vmem:[#allocation2 + $0x70] sm:$0xf0] }
  0x27   :  { %v3703_v30 = vld [vmem:[#allocation2 + $0x5e0] sm:$0xf]  ;;  %v4394_v32 = vld [vmem:[#allocation2 + $0x5ec] sm:$0xf0]  ;;  %v3576_v40 = vor.u32 %v4362_v29, %v3575_v28  ;;  %1481 = vmatpush.bf16.msra.mxu2 %v3208_v36  ;;  %v3577_v19 = vld [vmem:[#allocation2 + $0x4f0] sm:$0xf0] }
  0x28   :  { %v3831_v33 = vld [vmem:[#allocation2 + $0x6e0] sm:$0xf]  ;;  %v4426_v34 = vld [vmem:[#allocation2 + $0x6ec] sm:$0xf0]  ;;  %v3704_v43 = vor.u32 %v4394_v32, %v3703_v30  ;;  %1495 = vmatpush.bf16.msra.mxu3 %v3336_v39  ;;  %v3020_v30 = vor.u32 %v4220_v21, %v3017_v22 }
  0x29   :  { %v3559_v41 = vld [vmem:[#allocation2 + $0x4c0] sm:$0xf]  ;;  %v4358_v42 = vld [vmem:[#allocation2 + $0x4cc] sm:$0xf0]  ;;  %v3832_v44 = vor.u32 %v4426_v34, %v3831_v33  ;;  %1502 = vmatpush.bf16.msrb.mxu0 %v3576_v40  ;;  %v4216_v34 = vld [vmem:[#allocation2 + $0x64] sm:$0xf] }
  0x2a   :  { %v3687_v45 = vld [vmem:[#allocation2 + $0x5c0] sm:$0xf]  ;;  %v4390_v46 = vld [vmem:[#allocation2 + $0x5cc] sm:$0xf0]  ;;  %v3560_v55 = vor.u32 %v4358_v42, %v3559_v41  ;;  %1516 = vmatpush.bf16.msrb.mxu1 %v3704_v43  ;;  %1482 = vmatmul.bf16.vlgmr.msra.gmra.mxu2 %v4678_v0  ;;  %v3004_v42 = vor.u32 %v4216_v34, %v3001_v35  ;;  %v3177_v34 = vld [vmem:[#allocation2 + $0x1d0] sm:$0xf0] }
  0x2b   :  { %v3815_v47 = vld [vmem:[#allocation2 + $0x6c0] sm:$0xf]  ;;  %v4422_v49 = vld [vmem:[#allocation2 + $0x6cc] sm:$0xf0]  ;;  %1530 = vmatpush.bf16.msrb.mxu2 %v3832_v44  ;;  %v3688_v59 = vor.u32 %v4390_v46, %v3687_v45  ;;  %1496 = vmatmul.bf16.vlgmr.msra.gmra.mxu3 %v4697_v23  ;;  %v4212_v46 = vld [vmem:[#allocation2 + $0x44] sm:$0xf] }
  0x2c   :  { %v2923_v52 = vld [vmem:[%s5337_s0] sm:$0xf]  ;;  %v3816_v60 = vor.u32 %v4422_v49, %v3815_v47  ;;  %v4354_v61 = vld [vmem:[#allocation2 + $0x4ac] sm:$0xf0]  ;;  %1544 = vmatpush.bf16.msrb.mxu3 %v3068_v48  ;;  %v2985_v47 = vld [vmem:[#allocation2 + $0x50] sm:$0xf0] }
  0x2d   :  { %v3543_v56 = vld [vmem:[#allocation2 + $0x4a0] sm:$0xf]  ;;  %v4673_v57 = vor.u32 %v4200_v53, %v2923_v52  ;;  %v4386_v63 = vld [vmem:[#allocation2 + $0x5ac] sm:$0xf0]  ;;  %1503 = vmatpush.bf16.msrb.mxu0 %v3560_v55  ;;  %v2988_v54 = vor.u32 %v4212_v46, %v2985_v47  ;;  %v4292_v35 = vld [vmem:[#allocation2 + $0x2c4] sm:$0xf] }
  0x2e   :  { %v3671_v62 = vld [vmem:[#allocation2 + $0x5a0] sm:$0xf]  ;;  %v4418_v3 = vld [vmem:[#allocation2 + $0x6ac] sm:$0xf0]  ;;  %v3544_v8 = vor.u32 %v4354_v61, %v3543_v56  ;;  %1517 = vmatpush.bf16.msrb.mxu1 %v3688_v59  ;;  %v4208_v59 = vld [vmem:[#allocation2 + $0x24] sm:$0xf] }
  0x2f   :  { %v3799_v2 = vld [vmem:[#allocation2 + $0x6a0] sm:$0xf]  ;;  %1454 = vmatmul.bf16.vlgmr.msra.gmra.mxu0 %v4673_v57  ;;  %v4350_v10 = vld [vmem:[#allocation2 + $0x48c] sm:$0xf0]  ;;  %1531 = vmatpush.bf16.msrb.mxu2 %v3816_v60  ;;  %v3672_v12 = vor.u32 %v4386_v63, %v3671_v62  ;;  %v2969_v60 = vld [vmem:[#allocation2 + $0x30] sm:$0xf0] }
  0x30   :  { %v2925_v7 = vld [vmem:[%s5337_s0 + $0x1c] sm:$0xf0]  ;;  %v3800_v13 = vor.u32 %v4418_v3, %v3799_v2  ;;  %v4382_v15 = vld [vmem:[#allocation2 + $0x58c] sm:$0xf0]  ;;  %1545 = vmatpush.bf16.msrb.mxu3 %v3052_v1 }
  0x31   :  { %v3527_v9 = vld [vmem:[#allocation2 + $0x480] sm:$0xf]  ;;  %v4688_v11 = vor.u32 %v4197_v6, %v2925_v7  ;;  %v4414_v18 = vld [vmem:[#allocation2 + $0x68c] sm:$0xf0]  ;;  %1504 = vmatpush.bf16.msrb.mxu0 %v3544_v8  ;;  %v4204_v7 = vld [vmem:[#allocation2 + $0x4] sm:$0xf]  ;;  %v2972_v8 = vor.u32 %v4208_v59, %v2969_v60 }
  0x32   :  { %v3655_v14 = vld [vmem:[#allocation2 + $0x580] sm:$0xf]  ;;  %v3528_v24 = vor.u32 %v4350_v10, %v3527_v9  ;;  %1518 = vmatpush.bf16.msrb.mxu1 %v3672_v12  ;;  %v4346_v28 = vld [vmem:[#allocation2 + $0x46c] sm:$0xf0]  ;;  %v2953_v9 = vld [vmem:[#allocation2 + $0x10] sm:$0xf0] }
  0x33   :  { %v3783_v16 = vld [vmem:[#allocation2 + $0x680] sm:$0xf]  ;;  %1468 = vmatmul.bf16.vlgmr.msra.gmra.mxu1 %v4688_v11  ;;  %1532 = vmatpush.bf16.msrb.mxu2 %v3800_v13  ;;  %v3656_v25 = vor.u32 %v4382_v15, %v3655_v14  ;;  %v4378_v31 = vld [vmem:[#allocation2 + $0x56c] sm:$0xf0]  ;;  %v4264_v10 = vld [vmem:[#allocation2 + $0x1e4] sm:$0xf] }
  0x34   :  { %v3784_v26 = vor.u32 %v4414_v18, %v3783_v16  ;;  %v3511_v27 = vld [vmem:[#allocation2 + $0x460] sm:$0xf]  ;;  %1546 = vmatpush.bf16.msrb.mxu3 %v3036_v17  ;;  %v4410_v33 = vld [vmem:[#allocation2 + $0x66c] sm:$0xf0]  ;;  %v3193_v12 = vld [vmem:[#allocation2 + $0x1f0] sm:$0xf0] }
  0x35   :  { %v3639_v29 = vld [vmem:[#allocation2 + $0x560] sm:$0xf]  ;;  %1505 = vmatpush.bf16.msrb.mxu0 %v3528_v24  ;;  %v3512_v36 = vor.u32 %v4346_v28, %v3511_v27  ;;  %v4342_v40 = vld [vmem:[#allocation2 + $0x44c] sm:$0xf0]  ;;  %v4296_v13 = vld [vmem:[#allocation2 + $0x2e4] sm:$0xf]  ;;  %v3196_v27 = vor.u32 %v4264_v10, %v3193_v12 }
  0x36   :  { %v3767_v32 = vld [vmem:[#allocation2 + $0x660] sm:$0xf]  ;;  %1519 = vmatpush.bf16.msrb.mxu1 %v3656_v25  ;;  %v3640_v37 = vor.u32 %v4378_v31, %v3639_v29  ;;  %v4374_v43 = vld [vmem:[#allocation2 + $0x54c] sm:$0xf0]  ;;  %v3321_v14 = vld [vmem:[#allocation2 + $0x2f0] sm:$0xf0] }
  0x37   :  { %1533 = vmatpush.bf16.msrb.mxu2 %v3784_v26  ;;  %v3768_v38 = vor.u32 %v4410_v33, %v3767_v32  ;;  %v3495_v39 = vld [vmem:[#allocation2 + $0x440] sm:$0xf]  ;;  %v4406_v45 = vld [vmem:[#allocation2 + $0x64c] sm:$0xf0]  ;;  %v4328_v15 = vld [vmem:[#allocation2 + $0x3e4] sm:$0xf]  ;;  %v2956_v26 = vor.u32 %v4204_v7, %v2953_v9  ;;  %v3324_v31 = vor.u32 %v4296_v13, %v3321_v14 }
  0x38   :  { %v3623_v41 = vld [vmem:[#allocation2 + $0x540] sm:$0xf]  ;;  %1547 = vmatpush.bf16.msrb.mxu3 %v3020_v30  ;;  %v3496_v48 = vor.u32 %v4342_v40, %v3495_v39  ;;  %v4338_v52 = vld [vmem:[#allocation2 + $0x42c] sm:$0xf0]  ;;  %v3449_v17 = vld [vmem:[#allocation2 + $0x3f0] sm:$0xf0] }
  0x39   :  { %v3751_v44 = vld [vmem:[#allocation2 + $0x640] sm:$0xf]  ;;  %1506 = vmatpush.bf16.msrb.mxu0 %v3512_v36  ;;  %v3624_v49 = vor.u32 %v4374_v43, %v3623_v41  ;;  %v4370_v55 = vld [vmem:[#allocation2 + $0x52c] sm:$0xf0]  ;;  %v4360_v18 = vld [vmem:[#allocation2 + $0x4e4] sm:$0xf]  ;;  %v3452_v32 = vor.u32 %v4328_v15, %v3449_v17 }
  0x3a   :  { %1520 = vmatpush.bf16.msrb.mxu1 %v3640_v37  ;;  %v3752_v50 = vor.u32 %v4406_v45, %v3751_v44  ;;  %v3479_v51 = vld [vmem:[#allocation2 + $0x420] sm:$0xf]  ;;  %v4402_v58 = vld [vmem:[#allocation2 + $0x62c] sm:$0xf0]  ;;  %v4202_v24 = vld [vmem:[%s5337_s0 + $0x28] sm:$0xf0]  ;;  %v3580_v36 = vor.u32 %v4360_v18, %v3577_v19 }
  0x3b   :  { %1534 = vmatpush.bf16.msrb.mxu2 %v3768_v38  ;;  %v3607_v53 = vld [vmem:[#allocation2 + $0x520] sm:$0xf]  ;;  %v3480_v62 = vor.u32 %v4338_v52, %v3479_v51  ;;  %v4334_v63 = vld [vmem:[#allocation2 + $0x40c] sm:$0xf0]  ;;  %v2947_v25 = vld [vmem:[%s5337_s0 + $0x18] sm:$0xf] }
  0x3c   :  { %1548 = vmatpush.bf16.msrb.mxu3 %v3004_v42  ;;  %v3735_v56 = vld [vmem:[#allocation2 + $0x620] sm:$0xf]  ;;  %v4366_v2 = vld [vmem:[#allocation2 + $0x50c] sm:$0xf0]  ;;  %v3608_v3 = vor.u32 %v4370_v55, %v3607_v53  ;;  %v4203_v28 = vld [vmem:[%s5337_s0 + $0x30] sm:$0xf0] }
  0x3d   :  { %v3463_v61 = vld [vmem:[#allocation2 + $0x400] sm:$0xf]  ;;  %1507 = vmatpush.bf16.msrb.mxu0 %v3496_v48  ;;  %v3736_v4 = vor.u32 %v4402_v58, %v3735_v56  ;;  %v4398_v6 = vld [vmem:[#allocation2 + $0x60c] sm:$0xf0]  ;;  %v4199_v29 = vld [vmem:[%s5337_s0 + $0x14] sm:$0xf]  ;;  %v4720_v41 = vor.u32 %v4203_v28, %v2947_v25 }
  0x3e   :  { %v3591_v1 = vld [vmem:[#allocation2 + $0x500] sm:$0xf]  ;;  %1521 = vmatpush.bf16.msrb.mxu1 %v3624_v49  ;;  %v3464_v16 = vor.u32 %v4334_v63, %v3463_v61  ;;  %v2939_v22 = vld [vmem:[%s5337_s0 + $0x10] sm:$0xf]  ;;  %v4260_v33 = vld [vmem:[#allocation2 + $0x1c4] sm:$0xf] }
  0x3f   :  { %1535 = vmatpush.bf16.msrb.mxu2 %v3752_v50  ;;  %v3719_v5 = vld [vmem:[#allocation2 + $0x600] sm:$0xf]  ;;  %v3592_v20 = vor.u32 %v4366_v2, %v3591_v1  ;;  %v2941_v30 = vld [vmem:[%s5337_s0 + $0x2c] sm:$0xf0]  ;;  %v4718_v37 = vor.u32 %v4202_v24, %v2939_v22  ;;  %v3305_v38 = vld [vmem:[#allocation2 + $0x2d0] sm:$0xf0]  ;;  %v3180_v45 = vor.u32 %v4260_v33, %v3177_v34 }
  0x40   :  { %1549 = vmatpush.bf16.msrb.mxu3 %v2988_v54  ;;  %v3720_v21 = vor.u32 %v4398_v6, %v3719_v5  ;;  %v4324_v39 = vld [vmem:[#allocation2 + $0x3c4] sm:$0xf]  ;;  %v3433_v40 = vld [vmem:[#allocation2 + $0x3d0] sm:$0xf0]  ;;  %v4722_v42 = vor.u32 %v4199_v29, %v2941_v30  ;;  %v3308_v46 = vor.u32 %v4292_v35, %v3305_v38 }
  0x41   :  { %1508 = vmatpush.bf16.msrb.mxu0 %v3480_v62  ;;  %v4356_v43 = vld [vmem:[#allocation2 + $0x4c4] sm:$0xf]  ;;  %v3561_v44 = vld [vmem:[#allocation2 + $0x4d0] sm:$0xf0]  ;;  %v3436_v47 = vor.u32 %v4324_v39, %v3433_v40 }
  0x42   :  { %1522 = vmatpush.bf16.msrb.mxu1 %v3608_v3  ;;  %v4256_v48 = vld [vmem:[#allocation2 + $0x1a4] sm:$0xf]  ;;  %v3161_v49 = vld [vmem:[#allocation2 + $0x1b0] sm:$0xf0]  ;;  %v3564_v51 = vor.u32 %v4356_v43, %v3561_v44 }
  0x43   :  { %1536 = vmatpush.bf16.msrb.mxu2 %v3736_v4  ;;  %v4288_v50 = vld [vmem:[#allocation2 + $0x2a4] sm:$0xf]  ;;  %v3289_v52 = vld [vmem:[#allocation2 + $0x2b0] sm:$0xf0]  ;;  %v3164_v58 = vor.u32 %v4256_v48, %v3161_v49 }
  0x44   :  { %1550 = vmatpush.bf16.msrb.mxu3 %v2972_v8  ;;  %v4320_v53 = vld [vmem:[#allocation2 + $0x3a4] sm:$0xf]  ;;  %v3417_v54 = vld [vmem:[#allocation2 + $0x3b0] sm:$0xf0]  ;;  %v3292_v59 = vor.u32 %v4288_v50, %v3289_v52 }
  0x45   :  { %1509 = vmatpush.bf16.msrb.mxu0 %v3464_v16  ;;  %v4352_v55 = vld [vmem:[#allocation2 + $0x4a4] sm:$0xf]  ;;  %v3545_v56 = vld [vmem:[#allocation2 + $0x4b0] sm:$0xf0]  ;;  %v3420_v60 = vor.u32 %v4320_v53, %v3417_v54 }
  0x46   :  { %1523 = vmatpush.bf16.msrb.mxu1 %v3592_v20  ;;  %v4252_v61 = vld [vmem:[#allocation2 + $0x184] sm:$0xf]  ;;  %v3145_v62 = vld [vmem:[#allocation2 + $0x190] sm:$0xf0]  ;;  %v3548_v1 = vor.u32 %v4352_v55, %v3545_v56 }
  0x47   :  { %1537 = vmatpush.bf16.msrb.mxu2 %v3720_v21  ;;  %v4284_v63 = vld [vmem:[#allocation2 + $0x284] sm:$0xf]  ;;  %v3273_v2 = vld [vmem:[#allocation2 + $0x290] sm:$0xf0]  ;;  %v3148_v7 = vor.u32 %v4252_v61, %v3145_v62 }
  0x48   :  { %1551 = vmatpush.bf16.msrb.mxu3 %v2956_v26  ;;  %1510 = vmatmul.bf16.vlgmr.msrb.gmra.mxu0 %v4718_v37  ;;  %v4316_v3 = vld [vmem:[#allocation2 + $0x384] sm:$0xf]  ;;  %v3401_v4 = vld [vmem:[#allocation2 + $0x390] sm:$0xf0]  ;;  %v3276_v8 = vor.u32 %v4284_v63, %v3273_v2 }
  0x49   :  { %1558 = vmatpush.bf16.msra.mxu0 %v3196_v27  ;;  %1524 = vmatmul.bf16.vlgmr.msrb.gmra.mxu1 %v4722_v42  ;;  %v4348_v5 = vld [vmem:[#allocation2 + $0x484] sm:$0xf]  ;;  %v3529_v6 = vld [vmem:[#allocation2 + $0x490] sm:$0xf0]  ;;  %v3404_v9 = vor.u32 %v4316_v3, %v3401_v4  ;;  %v3071_v3 = vld [vmem:[#allocation2 + $0xe8] sm:$0xf] }
  0x4a   :  { %1572 = vmatpush.bf16.msra.mxu1 %v3324_v31  ;;  %1538 = vmatmul.bf16.vlgmr.msrb.gmra.mxu2 %v4720_v41  ;;  %v4248_v10 = vld [vmem:[#allocation2 + $0x164] sm:$0xf]  ;;  %v3129_v12 = vld [vmem:[#allocation2 + $0x170] sm:$0xf0]  ;;  %v3532_v14 = vor.u32 %v4348_v5, %v3529_v6  ;;  %v4235_v4 = vld [vmem:[#allocation2 + $0xf4] sm:$0xf0] }
  0x4b   :  { %1586 = vmatpush.bf16.msra.mxu2 %v3452_v32  ;;  %1552 = vmatmul.bf16.vlgmr.msrb.gmra.mxu3 %v4673_v57  ;;  %v4280_v13 = vld [vmem:[#allocation2 + $0x264] sm:$0xf]  ;;  %v3257_v15 = vld [vmem:[#allocation2 + $0x270] sm:$0xf0]  ;;  %v3132_v20 = vor.u32 %v4248_v10, %v3129_v12 }
  0x4c   :  { %1600 = vmatpush.bf16.msra.mxu3 %v3580_v36  ;;  %v4312_v16 = vld [vmem:[#allocation2 + $0x364] sm:$0xf]  ;;  %v3385_v17 = vld [vmem:[#allocation2 + $0x370] sm:$0xf0]  ;;  %v3260_v21 = vor.u32 %v4280_v13, %v3257_v15  ;;  %v3072_v13 = vor.u32 %v4235_v4, %v3071_v3 }
  0x4d   :  { %1559 = vmatpush.bf16.msra.mxu0 %v3180_v45  ;;  %v4344_v18 = vld [vmem:[#allocation2 + $0x464] sm:$0xf]  ;;  %v3513_v19 = vld [vmem:[#allocation2 + $0x470] sm:$0xf0]  ;;  %v3388_v22 = vor.u32 %v4312_v16, %v3385_v17 }
  0x4e   :  { %1573 = vmatpush.bf16.msra.mxu1 %v3308_v46  ;;  %v4244_v24 = vld [vmem:[#allocation2 + $0x144] sm:$0xf]  ;;  %v3113_v25 = vld [vmem:[#allocation2 + $0x150] sm:$0xf0]  ;;  %v3516_v27 = vor.u32 %v4344_v18, %v3513_v19  ;;  %v3055_v19 = vld [vmem:[#allocation2 + $0xc8] sm:$0xf] }
  0x4f   :  { %1587 = vmatpush.bf16.msra.mxu2 %v3436_v47  ;;  %v4276_v26 = vld [vmem:[#allocation2 + $0x244] sm:$0xf]  ;;  %v3241_v28 = vld [vmem:[#allocation2 + $0x250] sm:$0xf0]  ;;  %v3116_v33 = vor.u32 %v4244_v24, %v3113_v25 }
  0x50   :  { %1601 = vmatpush.bf16.msra.mxu3 %v3564_v51  ;;  %v4308_v29 = vld [vmem:[#allocation2 + $0x344] sm:$0xf]  ;;  %v3369_v30 = vld [vmem:[#allocation2 + $0x350] sm:$0xf0]  ;;  %v3244_v34 = vor.u32 %v4276_v26, %v3241_v28 }
  0x51   :  { %1560 = vmatpush.bf16.msra.mxu0 %v3164_v58  ;;  %v4340_v31 = vld [vmem:[#allocation2 + $0x444] sm:$0xf]  ;;  %v3497_v32 = vld [vmem:[#allocation2 + $0x450] sm:$0xf0]  ;;  %v3372_v35 = vor.u32 %v4308_v29, %v3369_v30 }
  0x52   :  { %1574 = vmatpush.bf16.msra.mxu1 %v3292_v59  ;;  %v4240_v36 = vld [vmem:[#allocation2 + $0x124] sm:$0xf]  ;;  %v3097_v38 = vld [vmem:[#allocation2 + $0x130] sm:$0xf0]  ;;  %v3500_v40 = vor.u32 %v4340_v31, %v3497_v32  ;;  %v3039_v32 = vld [vmem:[#allocation2 + $0xa8] sm:$0xf] }
  0x53   :  { %1588 = vmatpush.bf16.msra.mxu2 %v3420_v60  ;;  %v4272_v39 = vld [vmem:[#allocation2 + $0x224] sm:$0xf]  ;;  %v3225_v43 = vld [vmem:[#allocation2 + $0x230] sm:$0xf0]  ;;  %v3100_v48 = vor.u32 %v4240_v36, %v3097_v38 }
  0x54   :  { %1602 = vmatpush.bf16.msra.mxu3 %v3548_v1  ;;  %v4304_v44 = vld [vmem:[#allocation2 + $0x324] sm:$0xf]  ;;  %v3353_v45 = vld [vmem:[#allocation2 + $0x330] sm:$0xf0]  ;;  %v3228_v51 = vor.u32 %v4272_v39, %v3225_v43 }
  0x55   :  { %1561 = vmatpush.bf16.msra.mxu0 %v3148_v7  ;;  %v4336_v46 = vld [vmem:[#allocation2 + $0x424] sm:$0xf]  ;;  %v3481_v47 = vld [vmem:[#allocation2 + $0x430] sm:$0xf0]  ;;  %v3356_v52 = vor.u32 %v4304_v44, %v3353_v45  ;;  %v3199_v7 = vld [vmem:[#allocation2 + $0x1e8] sm:$0xf] }
  0x56   :  { %1575 = vmatpush.bf16.msra.mxu1 %v3276_v8  ;;  %v4236_v49 = vld [vmem:[#allocation2 + $0x104] sm:$0xf]  ;;  %v3081_v50 = vld [vmem:[#allocation2 + $0x110] sm:$0xf0]  ;;  %v3484_v56 = vor.u32 %v4336_v46, %v3481_v47  ;;  %v4267_v8 = vld [vmem:[#allocation2 + $0x1f4] sm:$0xf0] }
  0x57   :  { %1589 = vmatpush.bf16.msra.mxu2 %v3404_v9  ;;  %v4268_v53 = vld [vmem:[#allocation2 + $0x204] sm:$0xf]  ;;  %v3209_v54 = vld [vmem:[#allocation2 + $0x210] sm:$0xf0]  ;;  %v3084_v1 = vor.u32 %v4236_v49, %v3081_v50  ;;  %v3200_v17 = vor.u32 %v4267_v8, %v3199_v7  ;;  %v3023_v47 = vld [vmem:[#allocation2 + $0x88] sm:$0xf] }
  0x58   :  { %1603 = vmatpush.bf16.msra.mxu3 %v3532_v14  ;;  %v4300_v55 = vld [vmem:[#allocation2 + $0x304] sm:$0xf]  ;;  %v3337_v58 = vld [vmem:[#allocation2 + $0x310] sm:$0xf0]  ;;  %v3212_v5 = vor.u32 %v4268_v53, %v3209_v54  ;;  %v3151_v49 = vld [vmem:[#allocation2 + $0x188] sm:$0xf] }
  0x59   :  { %1562 = vmatpush.bf16.msra.mxu0 %v3132_v20  ;;  %v4332_v59 = vld [vmem:[#allocation2 + $0x404] sm:$0xf]  ;;  %v3465_v60 = vld [vmem:[#allocation2 + $0x410] sm:$0xf0]  ;;  %v3340_v6 = vor.u32 %v4300_v55, %v3337_v58  ;;  %v4231_v20 = vld [vmem:[#allocation2 + $0xd4] sm:$0xf0] }
  0x5a   :  { %1576 = vmatpush.bf16.msra.mxu1 %v3260_v21  ;;  %v4392_v61 = vld [vmem:[#allocation2 + $0x5e4] sm:$0xf]  ;;  %v3705_v62 = vld [vmem:[#allocation2 + $0x5f0] sm:$0xf0]  ;;  %v3468_v9 = vor.u32 %v4332_v59, %v3465_v60  ;;  %v3183_v21 = vld [vmem:[#allocation2 + $0x1c8] sm:$0xf]  ;;  %v3056_v26 = vor.u32 %v4231_v20, %v3055_v19 }
  0x5b   :  { %1590 = vmatpush.bf16.msra.mxu2 %v3388_v22  ;;  %v4424_v63 = vld [vmem:[#allocation2 + $0x6e4] sm:$0xf]  ;;  %v3833_v2 = vld [vmem:[#allocation2 + $0x6f0] sm:$0xf0]  ;;  %v3708_v10 = vor.u32 %v4392_v61, %v3705_v62  ;;  %v4263_v22 = vld [vmem:[#allocation2 + $0x1d4] sm:$0xf0] }
  0x5c   :  { %1604 = vmatpush.bf16.msra.mxu3 %v3516_v27  ;;  %v3836_v12 = vor.u32 %v4424_v63, %v3833_v2  ;;  %v4388_v14 = vld [vmem:[#allocation2 + $0x5c4] sm:$0xf]  ;;  %v3689_v15 = vld [vmem:[#allocation2 + $0x5d0] sm:$0xf0]  ;;  %v3184_v30 = vor.u32 %v4263_v22, %v3183_v21  ;;  %v4255_v50 = vld [vmem:[#allocation2 + $0x194] sm:$0xf0] }
  0x5d   :  { %1563 = vmatpush.bf16.msra.mxu0 %v3116_v33  ;;  %v4420_v16 = vld [vmem:[#allocation2 + $0x6c4] sm:$0xf]  ;;  %v3817_v18 = vld [vmem:[#allocation2 + $0x6d0] sm:$0xf0]  ;;  %v3692_v24 = vor.u32 %v4388_v14, %v3689_v15  ;;  %v4227_v33 = vld [vmem:[#allocation2 + $0xb4] sm:$0xf0]  ;;  %v3152_v58 = vor.u32 %v4255_v50, %v3151_v49 }
  0x5e   :  { %1577 = vmatpush.bf16.msra.mxu1 %v3244_v34  ;;  %v3820_v25 = vor.u32 %v4420_v16, %v3817_v18  ;;  %v4384_v27 = vld [vmem:[#allocation2 + $0x5a4] sm:$0xf]  ;;  %v3673_v28 = vld [vmem:[#allocation2 + $0x5b0] sm:$0xf0]  ;;  %v3167_v34 = vld [vmem:[#allocation2 + $0x1a8] sm:$0xf]  ;;  %v3040_v39 = vor.u32 %v4227_v33, %v3039_v32 }
  0x5f   :  { %1591 = vmatpush.bf16.msra.mxu2 %v3372_v35  ;;  %v4416_v29 = vld [vmem:[#allocation2 + $0x6a4] sm:$0xf]  ;;  %v3801_v31 = vld [vmem:[#allocation2 + $0x6b0] sm:$0xf0]  ;;  %v4259_v35 = vld [vmem:[#allocation2 + $0x1b4] sm:$0xf0]  ;;  %v3676_v36 = vor.u32 %v4384_v27, %v3673_v28 }
  0x60   :  { %1605 = vmatpush.bf16.msra.mxu3 %v3500_v40  ;;  %v3804_v38 = vor.u32 %v4416_v29, %v3801_v31  ;;  %v4380_v40 = vld [vmem:[#allocation2 + $0x584] sm:$0xf]  ;;  %v3657_v43 = vld [vmem:[#allocation2 + $0x590] sm:$0xf0]  ;;  %v3168_v45 = vor.u32 %v4259_v35, %v3167_v34  ;;  %v3007_v60 = vld [vmem:[#allocation2 + $0x68] sm:$0xf] }
  0x61   :  { %1564 = vmatpush.bf16.msra.mxu0 %v3100_v48  ;;  %v4412_v44 = vld [vmem:[#allocation2 + $0x684] sm:$0xf]  ;;  %v3785_v46 = vld [vmem:[#allocation2 + $0x690] sm:$0xf0]  ;;  %v4223_v48 = vld [vmem:[#allocation2 + $0x94] sm:$0xf0] }
  0x62   :  { %1578 = vmatpush.bf16.msra.mxu1 %v3228_v51  ;;  %v3660_v51 = vor.u32 %v4380_v40, %v3657_v43  ;;  %v3024_v53 = vor.u32 %v4223_v48, %v3023_v47  ;;  %v4376_v54 = vld [vmem:[#allocation2 + $0x564] sm:$0xf]  ;;  %v3641_v55 = vld [vmem:[#allocation2 + $0x570] sm:$0xf0]  ;;  %v4219_v61 = vld [vmem:[#allocation2 + $0x74] sm:$0xf0] }
  0x63   :  { %1592 = vmatpush.bf16.msra.mxu2 %v3356_v52  ;;  %v3788_v52 = vor.u32 %v4412_v44, %v3785_v46  ;;  %v3769_v59 = vld [vmem:[#allocation2 + $0x670] sm:$0xf0]  ;;  %v3135_v62 = vld [vmem:[#allocation2 + $0x168] sm:$0xf]  ;;  %v4251_v63 = vld [vmem:[#allocation2 + $0x174] sm:$0xf0]  ;;  %v3008_v3 = vor.u32 %v4219_v61, %v3007_v60 }
  0x64   :  { %1606 = vmatpush.bf16.msra.mxu3 %v3484_v56  ;;  %v4408_v56 = vld [vmem:[#allocation2 + $0x664] sm:$0xf]  ;;  %v3136_v7 = vor.u32 %v4251_v63, %v3135_v62  ;;  %v3753_v8 = vld [vmem:[#allocation2 + $0x650] sm:$0xf0]  ;;  %v2975_v22 = vld [vmem:[#allocation2 + $0x28] sm:$0xf] }
  0x65   :  { %1565 = vmatpush.bf16.msra.mxu0 %v3084_v1  ;;  %v3644_v1 = vor.u32 %v4376_v54, %v3641_v55  ;;  %v3772_v2 = vor.u32 %v4408_v56, %v3769_v59  ;;  %v4372_v4 = vld [vmem:[#allocation2 + $0x544] sm:$0xf]  ;;  %v3609_v18 = vld [vmem:[#allocation2 + $0x530] sm:$0xf0]  ;;  %v2959_v34 = vld [vmem:[#allocation2 + $0x8] sm:$0xf] }
  0x66   :  { %1579 = vmatpush.bf16.msra.mxu1 %v3212_v5  ;;  %v3625_v5 = vld [vmem:[#allocation2 + $0x550] sm:$0xf0]  ;;  %v4400_v19 = vld [vmem:[#allocation2 + $0x624] sm:$0xf]  ;;  %v3327_v40 = vld [vmem:[#allocation2 + $0x2e8] sm:$0xf] }
  0x67   :  { %1593 = vmatpush.bf16.msra.mxu2 %v3340_v6  ;;  %v4404_v6 = vld [vmem:[#allocation2 + $0x644] sm:$0xf]  ;;  %v3628_v14 = vor.u32 %v4372_v4, %v3625_v5  ;;  %v3737_v21 = vld [vmem:[#allocation2 + $0x630] sm:$0xf0]  ;;  %v4299_v43 = vld [vmem:[#allocation2 + $0x2f4] sm:$0xf0] }
  0x68   :  { %1607 = vmatpush.bf16.msra.mxu3 %v3468_v9  ;;  %1566 = vmatmul.bf16.vlgmr.msra.gmra.mxu0 %v4688_v11  ;;  %v2991_v9 = vld [vmem:[#allocation2 + $0x48] sm:$0xf]  ;;  %v3756_v15 = vor.u32 %v4404_v6, %v3753_v8  ;;  %v4364_v28 = vld [vmem:[#allocation2 + $0x504] sm:$0xf]  ;;  %v3593_v29 = vld [vmem:[#allocation2 + $0x510] sm:$0xf0]  ;;  %v3328_v54 = vor.u32 %v4299_v43, %v3327_v40 }
  0x69   :  { %1614 = vmatpush.bf16.msrb.mxu0 %v3708_v10  ;;  %1580 = vmatmul.bf16.vlgmr.msra.gmra.mxu1 %v4678_v0  ;;  %v4215_v10 = vld [vmem:[#allocation2 + $0x54] sm:$0xf0]  ;;  %v4396_v32 = vld [vmem:[#allocation2 + $0x604] sm:$0xf]  ;;  %v3721_v33 = vld [vmem:[#allocation2 + $0x610] sm:$0xf0] }
  0x6a   :  { %1628 = vmatpush.bf16.msrb.mxu1 %v3836_v12  ;;  %1594 = vmatmul.bf16.vlgmr.msra.gmra.mxu2 %v4697_v23  ;;  %v3119_v12 = vld [vmem:[#allocation2 + $0x148] sm:$0xf]  ;;  %v2992_v16 = vor.u32 %v4215_v10, %v2991_v9  ;;  %v4331_v46 = vld [vmem:[#allocation2 + $0x3f4] sm:$0xf0]  ;;  %v3724_v49 = vor.u32 %v4396_v32, %v3721_v33 }
  0x6b   :  { %1642 = vmatpush.bf16.msrb.mxu2 %v3072_v13  ;;  %1608 = vmatmul.bf16.vlgmr.msra.gmra.mxu3 %v4718_v37  ;;  %v4247_v13 = vld [vmem:[#allocation2 + $0x154] sm:$0xf0]  ;;  %v3455_v44 = vld [vmem:[#allocation2 + $0x3e8] sm:$0xf] }
  0x6c   :  { %1656 = vmatpush.bf16.msrb.mxu3 %v3200_v17  ;;  %v4368_v17 = vld [vmem:[#allocation2 + $0x524] sm:$0xf]  ;;  %v3120_v20 = vor.u32 %v4247_v13, %v3119_v12  ;;  %v3583_v47 = vld [vmem:[#allocation2 + $0x4e8] sm:$0xf]  ;;  %v4363_v48 = vld [vmem:[#allocation2 + $0x4f4] sm:$0xf0]  ;;  %v3456_v55 = vor.u32 %v4331_v46, %v3455_v44 }
  0x6d   :  { %1615 = vmatpush.bf16.msrb.mxu0 %v3692_v24  ;;  %v4211_v24 = vld [vmem:[#allocation2 + $0x34] sm:$0xf0]  ;;  %v3612_v27 = vor.u32 %v4368_v17, %v3609_v18  ;;  %v3584_v56 = vor.u32 %v4363_v48, %v3583_v47  ;;  %v3439_v60 = vld [vmem:[#allocation2 + $0x3c8] sm:$0xf] }
  0x6e   :  { %1629 = vmatpush.bf16.msrb.mxu1 %v3820_v25  ;;  %v3103_v25 = vld [vmem:[#allocation2 + $0x128] sm:$0xf]  ;;  %v2976_v31 = vor.u32 %v4211_v24, %v2975_v22  ;;  %v4295_v59 = vld [vmem:[#allocation2 + $0x2d4] sm:$0xf0] }
  0x6f   :  { %1643 = vmatpush.bf16.msrb.mxu2 %v3056_v26  ;;  %v4243_v26 = vld [vmem:[#allocation2 + $0x134] sm:$0xf0]  ;;  %v3567_v63 = vld [vmem:[#allocation2 + $0x4c8] sm:$0xf] }
  0x70   :  { %1657 = vmatpush.bf16.msrb.mxu3 %v3184_v30  ;;  %v3740_v30 = vor.u32 %v4400_v19, %v3737_v21  ;;  %v3104_v35 = vor.u32 %v4243_v26, %v3103_v25  ;;  %v4327_v62 = vld [vmem:[#allocation2 + $0x3d4] sm:$0xf0]  ;;  %v3423_v9 = vld [vmem:[#allocation2 + $0x3a8] sm:$0xf] }
  0x71   :  { %1616 = vmatpush.bf16.msrb.mxu0 %v3676_v36  ;;  %v4207_v36 = vld [vmem:[#allocation2 + $0x14] sm:$0xf0]  ;;  %v3440_v5 = vor.u32 %v4327_v62, %v3439_v60  ;;  %v3551_v13 = vld [vmem:[#allocation2 + $0x4a8] sm:$0xf] }
  0x72   :  { %1630 = vmatpush.bf16.msrb.mxu1 %v3804_v38  ;;  %v3087_v38 = vld [vmem:[#allocation2 + $0x108] sm:$0xf]  ;;  %v2960_v50 = vor.u32 %v4207_v36, %v2959_v34  ;;  %v4291_v8 = vld [vmem:[#allocation2 + $0x2b4] sm:$0xf0] }
  0x73   :  { %1644 = vmatpush.bf16.msrb.mxu2 %v3040_v39  ;;  %v4239_v39 = vld [vmem:[#allocation2 + $0x114] sm:$0xf0]  ;;  %v3407_v22 = vld [vmem:[#allocation2 + $0x388] sm:$0xf] }
  0x74   :  { %1658 = vmatpush.bf16.msrb.mxu3 %v3168_v45  ;;  %v3596_v45 = vor.u32 %v4364_v28, %v3593_v29  ;;  %v4323_v12 = vld [vmem:[#allocation2 + $0x3b4] sm:$0xf0]  ;;  %v3535_v26 = vld [vmem:[#allocation2 + $0x488] sm:$0xf] }
  0x75   :  { %1617 = vmatpush.bf16.msrb.mxu0 %v3660_v51  ;;  %v3711_v51 = vld [vmem:[#allocation2 + $0x5e8] sm:$0xf]  ;;  %v3424_v18 = vor.u32 %v4323_v12, %v3423_v9  ;;  %v4287_v21 = vld [vmem:[#allocation2 + $0x294] sm:$0xf0] }
  0x76   :  { %1631 = vmatpush.bf16.msrb.mxu1 %v3788_v52  ;;  %v4395_v52 = vld [vmem:[#allocation2 + $0x5f4] sm:$0xf0]  ;;  %v3663_v28 = vld [vmem:[#allocation2 + $0x588] sm:$0xf] }
  0x77   :  { %1645 = vmatpush.bf16.msrb.mxu2 %v3024_v53  ;;  %v3088_v53 = vor.u32 %v4239_v39, %v3087_v38  ;;  %v3712_v61 = vor.u32 %v4395_v52, %v3711_v51  ;;  %v4319_v25 = vld [vmem:[#allocation2 + $0x394] sm:$0xf0]  ;;  %v3263_v33 = vld [vmem:[#allocation2 + $0x268] sm:$0xf] }
  0x78   :  { %1659 = vmatpush.bf16.msrb.mxu3 %v3152_v58  ;;  %v3311_v58 = vld [vmem:[#allocation2 + $0x2c8] sm:$0xf]  ;;  %v4383_v29 = vld [vmem:[#allocation2 + $0x594] sm:$0xf0] }
  0x79   :  { %1618 = vmatpush.bf16.msrb.mxu0 %v3644_v1  ;;  %v4359_v1 = vld [vmem:[#allocation2 + $0x4d4] sm:$0xf0]  ;;  %v3312_v4 = vor.u32 %v4295_v59, %v3311_v58  ;;  %v3664_v36 = vor.u32 %v4383_v29, %v3663_v28  ;;  %v3519_v39 = vld [vmem:[#allocation2 + $0x468] sm:$0xf] }
  0x7a   :  { %1632 = vmatpush.bf16.msrb.mxu1 %v3772_v2  ;;  %v3695_v2 = vld [vmem:[#allocation2 + $0x5c8] sm:$0xf]  ;;  %v3568_v6 = vor.u32 %v4359_v1, %v3567_v63  ;;  %v4283_v34 = vld [vmem:[#allocation2 + $0x274] sm:$0xf0] }
  0x7b   :  { %1646 = vmatpush.bf16.msrb.mxu2 %v3008_v3  ;;  %v4391_v3 = vld [vmem:[#allocation2 + $0x5d4] sm:$0xf0]  ;;  %v3647_v43 = vld [vmem:[#allocation2 + $0x568] sm:$0xf] }
  0x7c   :  { %1660 = vmatpush.bf16.msrb.mxu3 %v3136_v7  ;;  %v3295_v7 = vld [vmem:[#allocation2 + $0x2a8] sm:$0xf]  ;;  %v3696_v10 = vor.u32 %v4391_v3, %v3695_v2  ;;  %v4315_v38 = vld [vmem:[#allocation2 + $0x374] sm:$0xf0] }
  0x7d   :  { %1619 = vmatpush.bf16.msrb.mxu0 %v3628_v14  ;;  %v4355_v14 = vld [vmem:[#allocation2 + $0x4b4] sm:$0xf0]  ;;  %v3296_v17 = vor.u32 %v4291_v8, %v3295_v7  ;;  %v3247_v48 = vld [vmem:[#allocation2 + $0x248] sm:$0xf] }
  0x7e   :  { %1633 = vmatpush.bf16.msrb.mxu1 %v3756_v15  ;;  %v3679_v15 = vld [vmem:[#allocation2 + $0x5a8] sm:$0xf]  ;;  %v3552_v19 = vor.u32 %v4355_v14, %v3551_v13  ;;  %v4347_v40 = vld [vmem:[#allocation2 + $0x474] sm:$0xf0] }
  0x7f   :  { %1647 = vmatpush.bf16.msrb.mxu2 %v2992_v16  ;;  %v4387_v16 = vld [vmem:[#allocation2 + $0x5b4] sm:$0xf0]  ;;  %v3520_v47 = vor.u32 %v4347_v40, %v3519_v39  ;;  %v3359_v63 = vld [vmem:[#allocation2 + $0x328] sm:$0xf]  ;;  %v4229_v39 = vld [vmem:[#allocation2 + $0xcc] sm:$0xf] }
  0x80   :  { %1661 = vmatpush.bf16.msrb.mxu3 %v3120_v20  ;;  %v3279_v20 = vld [vmem:[#allocation2 + $0x288] sm:$0xf]  ;;  %v3680_v24 = vor.u32 %v4387_v16, %v3679_v15  ;;  %v4379_v44 = vld [vmem:[#allocation2 + $0x574] sm:$0xf0] }
  0x81   :  { %1620 = vmatpush.bf16.msrb.mxu0 %v3612_v27  ;;  %v4351_v27 = vld [vmem:[#allocation2 + $0x494] sm:$0xf0]  ;;  %v3648_v51 = vor.u32 %v4379_v44, %v3647_v43  ;;  %v3487_v3 = vld [vmem:[#allocation2 + $0x428] sm:$0xf]  ;;  %v3057_v43 = vld [vmem:[#allocation2 + $0xd8] sm:$0xf0] }
  0x82   :  { %1634 = vmatpush.bf16.msrb.mxu1 %v3740_v30  ;;  %v3280_v30 = vor.u32 %v4287_v21, %v3279_v20  ;;  %v3536_v32 = vor.u32 %v4351_v27, %v3535_v26  ;;  %v4311_v52 = vld [vmem:[#allocation2 + $0x354] sm:$0xf0]  ;;  %v3215_v8 = vld [vmem:[#allocation2 + $0x208] sm:$0xf]  ;;  %v4265_v26 = vld [vmem:[#allocation2 + $0x1ec] sm:$0xf] }
  0x83   :  { %1648 = vmatpush.bf16.msrb.mxu2 %v2976_v31  ;;  %v3408_v31 = vor.u32 %v4319_v25, %v3407_v22  ;;  %v4275_v62 = vld [vmem:[#allocation2 + $0x234] sm:$0xf0]  ;;  %v3343_v13 = vld [vmem:[#allocation2 + $0x308] sm:$0xf]  ;;  %v4233_v22 = vld [vmem:[#allocation2 + $0xec] sm:$0xf] }
  0x84   :  { %1662 = vmatpush.bf16.msrb.mxu3 %v3104_v35  ;;  %v3391_v35 = vld [vmem:[#allocation2 + $0x368] sm:$0xf]  ;;  %v4307_v2 = vld [vmem:[#allocation2 + $0x334] sm:$0xf0]  ;;  %v3073_v25 = vld [vmem:[#allocation2 + $0xf8] sm:$0xf0] }
  0x85   :  { %1621 = vmatpush.bf16.msrb.mxu0 %v3596_v45  ;;  %v3264_v45 = vor.u32 %v4283_v34, %v3263_v33  ;;  %v3392_v46 = vor.u32 %v4315_v38, %v3391_v35  ;;  %v4271_v9 = vld [vmem:[#allocation2 + $0x214] sm:$0xf0]  ;;  %v3471_v15 = vld [vmem:[#allocation2 + $0x408] sm:$0xf]  ;;  %v3201_v27 = vld [vmem:[#allocation2 + $0x1f8] sm:$0xf0]  ;;  %v3076_v34 = vor.u32 %v4233_v22, %v3073_v25 }
  0x86   :  { %1635 = vmatpush.bf16.msrb.mxu1 %v3724_v49  ;;  %v4279_v49 = vld [vmem:[#allocation2 + $0x254] sm:$0xf0]  ;;  %v3839_v20 = vld [vmem:[#allocation2 + $0x6e8] sm:$0xf]  ;;  %v3204_v35 = vor.u32 %v4265_v26, %v3201_v27  ;;  %v4261_v44 = vld [vmem:[#allocation2 + $0x1cc] sm:$0xf] }
  0x87   :  { %1649 = vmatpush.bf16.msrb.mxu2 %v2960_v50  ;;  %v3375_v50 = vld [vmem:[#allocation2 + $0x348] sm:$0xf]  ;;  %v3248_v58 = vor.u32 %v4279_v49, %v3247_v48  ;;  %v4303_v14 = vld [vmem:[#allocation2 + $0x314] sm:$0xf0]  ;;  %v3060_v49 = vor.u32 %v4229_v39, %v3057_v43  ;;  %v4281_v22 = vld [vmem:[#allocation2 + $0x26c] sm:$0xf] }
  0x88   :  { %1663 = vmatpush.bf16.msrb.mxu3 %v3088_v53  ;;  %1622 = vmatmul.bf16.vlgmr.msrb.gmra.mxu0 %v4722_v42  ;;  %v3503_v53 = vld [vmem:[#allocation2 + $0x448] sm:$0xf]  ;;  %v3376_v59 = vor.u32 %v4311_v52, %v3375_v50  ;;  %v4427_v21 = vld [vmem:[#allocation2 + $0x6f4] sm:$0xf0]  ;;  %v3344_v28 = vor.u32 %v4303_v14, %v3343_v13  ;;  %v4277_v39 = vld [vmem:[#allocation2 + $0x24c] sm:$0xf] }
  0x89   :  { %1670 = vmatpush.bf16.msra.mxu0 %v3328_v54  ;;  %1636 = vmatmul.bf16.vlgmr.msrb.gmra.mxu1 %v4720_v41  ;;  %v4343_v54 = vld [vmem:[#allocation2 + $0x454] sm:$0xf0]  ;;  %v3840_v33 = vor.u32 %v4427_v21, %v3839_v20  ;;  %v3775_v14 = vld [vmem:[#allocation2 + $0x668] sm:$0xf]  ;;  %v4249_v20 = vld [vmem:[#allocation2 + $0x16c] sm:$0xf] }
  0x8a   :  { %1684 = vmatpush.bf16.msra.mxu1 %v3456_v55  ;;  %1650 = vmatmul.bf16.vlgmr.msrb.gmra.mxu2 %v4673_v57  ;;  %v3631_v55 = vld [vmem:[#allocation2 + $0x548] sm:$0xf]  ;;  %v3504_v60 = vor.u32 %v4343_v54, %v3503_v53  ;;  %v4423_v38 = vld [vmem:[#allocation2 + $0x6d4] sm:$0xf0]  ;;  %v4225_v53 = vld [vmem:[#allocation2 + $0xac] sm:$0xf] }
  0x8b   :  { %1698 = vmatpush.bf16.msra.mxu2 %v3584_v56  ;;  %1664 = vmatmul.bf16.vlgmr.msrb.gmra.mxu3 %v4688_v11  ;;  %v4375_v56 = vld [vmem:[#allocation2 + $0x554] sm:$0xf0]  ;;  %v3137_v21 = vld [vmem:[#allocation2 + $0x178] sm:$0xf0] }
  0x8c   :  { %1712 = vmatpush.bf16.msra.mxu3 %v3712_v61  ;;  %v3231_v61 = vld [vmem:[#allocation2 + $0x228] sm:$0xf]  ;;  %v3632_v1 = vor.u32 %v4375_v56, %v3631_v55  ;;  %v4419_v52 = vld [vmem:[#allocation2 + $0x6b4] sm:$0xf0]  ;;  %v3041_v55 = vld [vmem:[#allocation2 + $0xb8] sm:$0xf0] }
  0x8d   :  { %1671 = vmatpush.bf16.msra.mxu0 %v3312_v4  ;;  %v4339_v4 = vld [vmem:[#allocation2 + $0x434] sm:$0xf0]  ;;  %v3232_v7 = vor.u32 %v4275_v62, %v3231_v61  ;;  %v4257_v56 = vld [vmem:[#allocation2 + $0x1ac] sm:$0xf]  ;;  %v3044_v62 = vor.u32 %v4225_v53, %v3041_v55  ;;  %v3105_v53 = vld [vmem:[#allocation2 + $0x138] sm:$0xf0] }
  0x8e   :  { %1685 = vmatpush.bf16.msra.mxu1 %v3440_v5  ;;  %v3615_v5 = vld [vmem:[#allocation2 + $0x528] sm:$0xf]  ;;  %v3488_v12 = vor.u32 %v4339_v4, %v3487_v3  ;;  %v4221_v3 = vld [vmem:[#allocation2 + $0x8c] sm:$0xf]  ;;  %v3233_v55 = vld [vmem:[#allocation2 + $0x238] sm:$0xf0] }
  0x8f   :  { %1699 = vmatpush.bf16.msra.mxu2 %v3568_v6  ;;  %v4371_v6 = vld [vmem:[#allocation2 + $0x534] sm:$0xf0] }
  0x90   :  { %1713 = vmatpush.bf16.msra.mxu3 %v3696_v10  ;;  %v3360_v10 = vor.u32 %v4307_v2, %v3359_v63  ;;  %v3616_v16 = vor.u32 %v4371_v6, %v3615_v5  ;;  %v4415_v2 = vld [vmem:[#allocation2 + $0x694] sm:$0xf0]  ;;  %v3025_v5 = vld [vmem:[#allocation2 + $0x98] sm:$0xf0]  ;;  %v4253_v6 = vld [vmem:[#allocation2 + $0x18c] sm:$0xf] }
  0x91   :  { %1672 = vmatpush.bf16.msra.mxu0 %v3296_v17  ;;  %v4335_v17 = vld [vmem:[#allocation2 + $0x414] sm:$0xf0] }
  0x92   :  { %1686 = vmatpush.bf16.msra.mxu1 %v3424_v18  ;;  %v3599_v18 = vld [vmem:[#allocation2 + $0x508] sm:$0xf]  ;;  %v3472_v29 = vor.u32 %v4335_v17, %v3471_v15  ;;  %v4411_v15 = vld [vmem:[#allocation2 + $0x674] sm:$0xf0] }
  0x93   :  { %1700 = vmatpush.bf16.msra.mxu2 %v3552_v19  ;;  %v4367_v19 = vld [vmem:[#allocation2 + $0x514] sm:$0xf0]  ;;  %v3776_v26 = vor.u32 %v4411_v15, %v3775_v14  ;;  %v4361_v14 = vld [vmem:[#allocation2 + $0x4ec] sm:$0xf] }
  0x94   :  { %1714 = vmatpush.bf16.msra.mxu3 %v3680_v24  ;;  %v3216_v24 = vor.u32 %v4271_v9, %v3215_v8  ;;  %v4285_v8 = vld [vmem:[#allocation2 + $0x28c] sm:$0xf]  ;;  %v3281_v9 = vld [vmem:[#allocation2 + $0x298] sm:$0xf0] }
  0x95   :  { %1673 = vmatpush.bf16.msra.mxu0 %v3280_v30  ;;  %v4297_v30 = vld [vmem:[#allocation2 + $0x2ec] sm:$0xf] }
  0x96   :  { %1687 = vmatpush.bf16.msra.mxu1 %v3408_v31  ;;  %v3329_v31 = vld [vmem:[#allocation2 + $0x2f8] sm:$0xf0] }
  0x97   :  { %1701 = vmatpush.bf16.msra.mxu2 %v3536_v32  ;;  %v3600_v32 = vor.u32 %v4367_v19, %v3599_v18  ;;  %v3332_v40 = vor.u32 %v4297_v30, %v3329_v31  ;;  %v3284_v18 = vor.u32 %v4285_v8, %v3281_v9  ;;  %v3009_v19 = vld [vmem:[#allocation2 + $0x78] sm:$0xf0]  ;;  %v3759_v30 = vld [vmem:[#allocation2 + $0x648] sm:$0xf]  ;;  %v4407_v31 = vld [vmem:[#allocation2 + $0x654] sm:$0xf0] }
  0x98   :  { %1715 = vmatpush.bf16.msra.mxu3 %v3664_v36  ;;  %v3823_v36 = vld [vmem:[#allocation2 + $0x6c8] sm:$0xf]  ;;  %v3217_v8 = vld [vmem:[#allocation2 + $0x218] sm:$0xf0] }
  0x99   :  { %1674 = vmatpush.bf16.msra.mxu0 %v3264_v45  ;;  %v3185_v45 = vld [vmem:[#allocation2 + $0x1d8] sm:$0xf0]  ;;  %v3824_v48 = vor.u32 %v4423_v38, %v3823_v36 }
  0x9a   :  { %1688 = vmatpush.bf16.msra.mxu1 %v3392_v46  ;;  %v4293_v46 = vld [vmem:[#allocation2 + $0x2cc] sm:$0xf]  ;;  %v3188_v50 = vor.u32 %v4261_v44, %v3185_v45  ;;  %v3121_v36 = vld [vmem:[#allocation2 + $0x158] sm:$0xf0]  ;;  %v3760_v44 = vor.u32 %v4407_v31, %v3759_v30 }
  0x9b   :  { %1702 = vmatpush.bf16.msra.mxu2 %v3520_v47  ;;  %v3313_v47 = vld [vmem:[#allocation2 + $0x2d8] sm:$0xf0]  ;;  %v4325_v30 = vld [vmem:[#allocation2 + $0x3cc] sm:$0xf] }
  0x9c   :  { %1716 = vmatpush.bf16.msra.mxu3 %v3648_v51  ;;  %v3807_v51 = vld [vmem:[#allocation2 + $0x6a8] sm:$0xf]  ;;  %v3316_v54 = vor.u32 %v4293_v46, %v3313_v47  ;;  %v3441_v31 = vld [vmem:[#allocation2 + $0x3d8] sm:$0xf0] }
  0x9d   :  { %1675 = vmatpush.bf16.msra.mxu0 %v3248_v58  ;;  %v3169_v58 = vld [vmem:[#allocation2 + $0x1b8] sm:$0xf0]  ;;  %v3808_v61 = vor.u32 %v4419_v52, %v3807_v51  ;;  %v3743_v47 = vld [vmem:[#allocation2 + $0x628] sm:$0xf]  ;;  %v4241_v52 = vld [vmem:[#allocation2 + $0x12c] sm:$0xf] }
  0x9e   :  { %1689 = vmatpush.bf16.msra.mxu1 %v3376_v59  ;;  %v4289_v59 = vld [vmem:[#allocation2 + $0x2ac] sm:$0xf]  ;;  %v3172_v63 = vor.u32 %v4257_v56, %v3169_v58  ;;  %v2977_v51 = vld [vmem:[#allocation2 + $0x38] sm:$0xf0] }
  0x9f   :  { %1703 = vmatpush.bf16.msra.mxu2 %v3504_v60  ;;  %v3297_v60 = vld [vmem:[#allocation2 + $0x2b8] sm:$0xf0] }
  0xa0   :  { %1717 = vmatpush.bf16.msra.mxu3 %v3632_v1  ;;  %v3791_v1 = vld [vmem:[#allocation2 + $0x688] sm:$0xf]  ;;  %v3300_v4 = vor.u32 %v4289_v59, %v3297_v60 }
  0xa1   :  { %1676 = vmatpush.bf16.msra.mxu0 %v3232_v7  ;;  %v3153_v7 = vld [vmem:[#allocation2 + $0x198] sm:$0xf0]  ;;  %v3727_v60 = vld [vmem:[#allocation2 + $0x608] sm:$0xf] }
  0xa2   :  { %1690 = vmatpush.bf16.msra.mxu1 %v3360_v10  ;;  %v3792_v10 = vor.u32 %v4415_v2, %v3791_v1  ;;  %v3156_v13 = vor.u32 %v4253_v6, %v3153_v7  ;;  %v3108_v1 = vor.u32 %v4241_v52, %v3105_v53  ;;  %v4205_v2 = vld [vmem:[#allocation2 + $0xc] sm:$0xf]  ;;  %v3089_v6 = vld [vmem:[#allocation2 + $0x118] sm:$0xf0] }
  0xa3   :  { %1704 = vmatpush.bf16.msra.mxu2 %v3488_v12  ;;  %v3028_v12 = vor.u32 %v4221_v3, %v3025_v5  ;;  %v2961_v3 = vld [vmem:[#allocation2 + $0x18] sm:$0xf0]  ;;  %v4269_v7 = vld [vmem:[#allocation2 + $0x20c] sm:$0xf] }
  0xa4   :  { %1718 = vmatpush.bf16.msra.mxu3 %v3616_v16  ;;  %v4217_v16 = vld [vmem:[#allocation2 + $0x6c] sm:$0xf]  ;;  %v3681_v53 = vld [vmem:[#allocation2 + $0x5b8] sm:$0xf0] }
  0xa5   :  { %1677 = vmatpush.bf16.msra.mxu0 %v3216_v24  ;;  %v3265_v24 = vld [vmem:[#allocation2 + $0x278] sm:$0xf0]  ;;  %v4385_v52 = vld [vmem:[#allocation2 + $0x5ac] sm:$0xf] }
  0xa6   :  { %1691 = vmatpush.bf16.msra.mxu1 %v3344_v28  ;;  %v3012_v28 = vor.u32 %v4217_v16, %v3009_v19  ;;  %v4393_v19 = vld [vmem:[#allocation2 + $0x5ec] sm:$0xf] }
  0xa7   :  { %1705 = vmatpush.bf16.msra.mxu2 %v3472_v29  ;;  %v3140_v29 = vor.u32 %v4249_v20, %v3137_v21  ;;  %v3713_v20 = vld [vmem:[#allocation2 + $0x5f8] sm:$0xf0]  ;;  %v2964_v21 = vor.u32 %v4205_v2, %v2961_v3  ;;  %v4381_v2 = vld [vmem:[#allocation2 + $0x58c] sm:$0xf] }
  0xa8   :  { %1719 = vmatpush.bf16.msra.mxu3 %v3600_v32  ;;  %1678 = vmatmul.bf16.vlgmr.msra.gmra.mxu0 %v4678_v0  ;;  %v4213_v32 = vld [vmem:[#allocation2 + $0x4c] sm:$0xf] }
  0xa9   :  { %1726 = vmatpush.bf16.msrb.mxu0 %v3840_v33  ;;  %1692 = vmatmul.bf16.vlgmr.msra.gmra.mxu1 %v4697_v23  ;;  %v3268_v33 = vor.u32 %v4281_v22, %v3265_v24  ;;  %v4425_v24 = vld [vmem:[#allocation2 + $0x6ec] sm:$0xf] }
  0xaa   :  { %1740 = vmatpush.bf16.msrb.mxu1 %v3076_v34  ;;  %1706 = vmatmul.bf16.vlgmr.msra.gmra.mxu2 %v4718_v37  ;;  %v2993_v34 = vld [vmem:[#allocation2 + $0x58] sm:$0xf0] }
  0xab   :  { %1754 = vmatpush.bf16.msrb.mxu2 %v3204_v35  ;;  %1720 = vmatmul.bf16.vlgmr.msra.gmra.mxu3 %v4722_v42  ;;  %v4245_v35 = vld [vmem:[#allocation2 + $0x14c] sm:$0xf]  ;;  %v2996_v45 = vor.u32 %v4213_v32, %v2993_v34  ;;  %v3569_v34 = vld [vmem:[#allocation2 + $0x4d8] sm:$0xf0] }
  0xac   :  { %1768 = vmatpush.bf16.msrb.mxu3 %v3332_v40  ;;  %v1455_v17 = vpop.f32.mrf.mxu0  ;;  %v3249_v40 = vld [vmem:[#allocation2 + $0x258] sm:$0xf0]  ;;  %v3124_v46 = vor.u32 %v4245_v35, %v3121_v36  ;;  %v4357_v32 = vld [vmem:[#allocation2 + $0x4cc] sm:$0xf] }
  0xad   :  { %1727 = vmatpush.bf16.msrb.mxu0 %v3824_v48  ;;  %v1483_v38 = vpop.f32.mrf.mxu2  ;;  %v4403_v48 = vld [vmem:[#allocation2 + $0x634] sm:$0xf0]  ;;  %v4389_v35 = vld [vmem:[#allocation2 + $0x5cc] sm:$0xf]  ;;  %v3697_v36 = vld [vmem:[#allocation2 + $0x5d8] sm:$0xf0] }
  0xae   :  { %1741 = vmatpush.bf16.msrb.mxu1 %v3060_v49  ;;  %v4209_v49 = vld [vmem:[#allocation2 + $0x2c] sm:$0xf]  ;;  %v3744_v59 = vor.u32 %v4403_v48, %v3743_v47  ;;  %v1497_v9 = vpop.f32.mrf.mxu3  ;;  %v3425_v47 = vld [vmem:[#allocation2 + $0x3b8] sm:$0xf0] }
  0xaf   :  { %1755 = vmatpush.bf16.msrb.mxu2 %v3188_v50  ;;  %v3252_v50 = vor.u32 %v4277_v39, %v3249_v40  ;;  %v3825_v39 = vld [vmem:[#allocation2 + $0x6d8] sm:$0xf0]  ;;  %v3444_v40 = vor.u32 %v4325_v30, %v3441_v31  ;;  %v4353_v48 = vld [vmem:[#allocation2 + $0x4ac] sm:$0xf] }
  0xb0   :  { %1769 = vmatpush.bf16.msrb.mxu3 %v3316_v54  ;;  %v1469_v25 = vpop.f32.mrf.mxu1  ;;  %v4273_v54 = vld [vmem:[#allocation2 + $0x22c] sm:$0xf]  ;;  %v3633_v31 = vld [vmem:[#allocation2 + $0x558] sm:$0xf0] }
  0xb1   :  { %1728 = vmatpush.bf16.msrb.mxu0 %v3808_v61  ;;  %v1470_v27 = vadd.f32 %v1469_v25, %v1455_v17  ;;  %v4399_v61 = vld [vmem:[#allocation2 + $0x614] sm:$0xf0]  ;;  %v3236_v5 = vor.u32 %v4273_v54, %v3233_v55  ;;  %v3841_v25 = vld [vmem:[#allocation2 + $0x6f8] sm:$0xf0]  ;;  %v4417_v54 = vld [vmem:[#allocation2 + $0x6ac] sm:$0xf] }
  0xb2   :  { %1742 = vmatpush.bf16.msrb.mxu1 %v3044_v62  ;;  %v3728_v17 = vor.u32 %v4399_v61, %v3727_v60  ;;  %v3809_v55 = vld [vmem:[#allocation2 + $0x6b8] sm:$0xf0]  ;;  %v4317_v60 = vld [vmem:[#allocation2 + $0x38c] sm:$0xf] }
  0xb3   :  { %1756 = vmatpush.bf16.msrb.mxu2 %v3172_v63  ;;  %v1484_v43 = vadd.f32 %v1483_v38, %v1470_v27  ;;  %v2980_v63 = vor.u32 %v4209_v49, %v2977_v51  ;;  %v4421_v38 = vld [vmem:[#allocation2 + $0x6cc] sm:$0xf]  ;;  %v3553_v51 = vld [vmem:[#allocation2 + $0x4b8] sm:$0xf0] }
  0xb4   :  { %1770 = vmatpush.bf16.msrb.mxu3 %v3300_v4  ;;  %v1457_v56 = vpop.f32.mrf.mxu0  ;;  %v4237_v4 = vld [vmem:[#allocation2 + $0x10c] sm:$0xf]  ;;  %v3409_v61 = vld [vmem:[#allocation2 + $0x398] sm:$0xf0] }
  0xb5   :  { %1729 = vmatpush.bf16.msrb.mxu0 %v3792_v10  ;;  %v1485_v10 = vpop.f32.mrf.mxu2  ;;  %v4740_v15 = vadd.f32 %v1497_v9, %v1484_v43  ;;  %v3092_v22 = vor.u32 %v4237_v4, %v3089_v6  ;;  %v3793_v4 = vld [vmem:[#allocation2 + $0x698] sm:$0xf0]  ;;  %v3412_v6 = vor.u32 %v4317_v60, %v3409_v61  ;;  %v4313_v9 = vld [vmem:[#allocation2 + $0x36c] sm:$0xf] }
  0xb6   :  { %1743 = vmatpush.bf16.msrb.mxu1 %v3028_v12  ;;  %v4329_v12 = vld [vmem:[#allocation2 + $0x3ec] sm:$0xf]  ;;  %v1499_v43 = vpop.f32.mrf.mxu3 }
  0xb7   :  { %1757 = vmatpush.bf16.msrb.mxu2 %v3156_v13  ;;  %v3457_v13 = vld [vmem:[#allocation2 + $0x3f8] sm:$0xf0]  ;;  %v4373_v30 = vld [vmem:[#allocation2 + $0x54c] sm:$0xf] }
  0xb8   :  { %1771 = vmatpush.bf16.msrb.mxu3 %v3284_v18  ;;  %v1471_v58 = vpop.f32.mrf.mxu1  ;;  %v3585_v18 = vld [vmem:[#allocation2 + $0x4f8] sm:$0xf0]  ;;  %v3460_v27 = vor.u32 %v4329_v12, %v3457_v13  ;;  %v4345_v12 = vld [vmem:[#allocation2 + $0x46c] sm:$0xf] }
  0xb9   :  { %1730 = vmatpush.bf16.msrb.mxu0 %v3776_v26  ;;  %v1472_v62 = vadd.f32 %v1471_v58, %v1457_v56  ;;  %v3220_v26 = vor.u32 %v4269_v7, %v3217_v8  ;;  %v3556_v58 = vor.u32 %v4353_v48, %v3553_v51  ;;  %v4369_v51 = vld [vmem:[#allocation2 + $0x52c] sm:$0xf] }
  0xba   :  { %1744 = vmatpush.bf16.msrb.mxu1 %v3012_v28  ;;  %v3588_v28 = vor.u32 %v4361_v14, %v3585_v18  ;;  %v3649_v18 = vld [vmem:[#allocation2 + $0x578] sm:$0xf0]  ;;  %v4333_v60 = vld [vmem:[#allocation2 + $0x40c] sm:$0xf] }
  0xbb   :  { %1758 = vmatpush.bf16.msrb.mxu2 %v3140_v29  ;;  %v1486_v16 = vadd.f32 %v1485_v10, %v1472_v62  ;;  %v3716_v29 = vor.u32 %v4393_v19, %v3713_v20  ;;  %v4349_v62 = vld [vmem:[#allocation2 + $0x48c] sm:$0xf]  ;;  %v3393_v10 = vld [vmem:[#allocation2 + $0x378] sm:$0xf0] }
  0xbc   :  { %1772 = vmatpush.bf16.msrb.mxu3 %v3268_v33  ;;  %v3844_v33 = vor.u32 %v4425_v24, %v3841_v25  ;;  %v4409_v19 = vld [vmem:[#allocation2 + $0x66c] sm:$0xf]  ;;  %v3777_v20 = vld [vmem:[#allocation2 + $0x678] sm:$0xf0] }
  0xbd   :  { %1731 = vmatpush.bf16.msrb.mxu0 %v3760_v44  ;;  %v3572_v44 = vor.u32 %v4357_v32, %v3569_v34  ;;  %v4742_v49 = vadd.f32 %v1499_v43, %v1486_v16  ;;  %v3521_v16 = vld [vmem:[#allocation2 + $0x478] sm:$0xf0]  ;;  %v4309_v24 = vld [vmem:[#allocation2 + $0x34c] sm:$0xf]  ;;  %v3636_v43 = vor.u32 %v4373_v30, %v3633_v31 }
  0xbe   :  { %1745 = vmatpush.bf16.msrb.mxu1 %v2996_v45  ;;  %v3700_v45 = vor.u32 %v4389_v35, %v3697_v36  ;;  %v3377_v25 = vld [vmem:[#allocation2 + $0x358] sm:$0xf0]  ;;  %v4405_v34 = vld [vmem:[#allocation2 + $0x64c] sm:$0xf] }
  0xbf   :  { %1759 = vmatpush.bf16.msrb.mxu2 %v3124_v46  ;;  %v4321_v46 = vld [vmem:[#allocation2 + $0x3ac] sm:$0xf]  ;;  %v3761_v35 = vld [vmem:[#allocation2 + $0x658] sm:$0xf0] }
  0xc0   :  { %1773 = vmatpush.bf16.msrb.mxu3 %v3252_v50  ;;  %v3828_v50 = vor.u32 %v4421_v38, %v3825_v39  ;;  %v3428_v56 = vor.u32 %v4321_v46, %v3425_v47  ;;  %v3380_v38 = vor.u32 %v4309_v24, %v3377_v25  ;;  %v4337_v46 = vld [vmem:[#allocation2 + $0x42c] sm:$0xf]  ;;  %v3764_v47 = vor.u32 %v4405_v34, %v3761_v35 }
  0xc1   :  { %1732 = vmatpush.bf16.msrb.mxu0 %v3744_v59  ;;  %v3684_v59 = vor.u32 %v4385_v52, %v3681_v53  ;;  %v3617_v52 = vld [vmem:[#allocation2 + $0x538] sm:$0xf0]  ;;  %v4401_v53 = vld [vmem:[#allocation2 + $0x62c] sm:$0xf] }
  0xc2   :  { %1746 = vmatpush.bf16.msrb.mxu1 %v2980_v63  ;;  %v3812_v63 = vor.u32 %v4417_v54, %v3809_v55  ;;  %v3745_v54 = vld [vmem:[#allocation2 + $0x638] sm:$0xf0] }
  0xc3   :  { %1760 = vmatpush.bf16.msrb.mxu2 %v3108_v1  ;;  %v3537_v1 = vld [vmem:[#allocation2 + $0x498] sm:$0xf0]  ;;  %v3748_v61 = vor.u32 %v4401_v53, %v3745_v54 }
  0xc4   :  { %1774 = vmatpush.bf16.msrb.mxu3 %v3236_v5  ;;  %v3540_v7 = vor.u32 %v4349_v62, %v3537_v1  ;;  %v4365_v1 = vld [vmem:[#allocation2 + $0x50c] sm:$0xf] }
  0xc5   :  { %1733 = vmatpush.bf16.msrb.mxu0 %v3728_v17  ;;  %v1511_v3 = vpop.f32.mrf.mxu0  ;;  %v4377_v17 = vld [vmem:[#allocation2 + $0x56c] sm:$0xf] }
  0xc6   :  { %1747 = vmatpush.bf16.msrb.mxu1 %v2964_v21  ;;  %v1512_v5 = vadd.f32 %v1511_v3, %v4740_v15  ;;  %v3396_v21 = vor.u32 %v4313_v9, %v3393_v10  ;;  %v3524_v15 = vor.u32 %v4345_v12, %v3521_v16  ;;  %v4397_v3 = vld [vmem:[#allocation2 + $0x60c] sm:$0xf] }
  0xc7   :  { %1761 = vmatpush.bf16.msrb.mxu2 %v3092_v22  ;;  %v3652_v22 = vor.u32 %v4377_v17, %v3649_v18 }
  0xc8   :  { %1775 = vmatpush.bf16.msrb.mxu3 %v3220_v26  ;;  %1734 = vmatmul.bf16.vlgmr.msrb.gmra.mxu0 %v4720_v41  ;;  %v4341_v26 = vld [vmem:[#allocation2 + $0x44c] sm:$0xf] }
  0xc9   :  { %1782 = vmatpush.bf16.msra.mxu0 %v3460_v27  ;;  %1748 = vmatmul.bf16.vlgmr.msrb.gmra.mxu1 %v4673_v57  ;;  %v1525_v57 = vpop.f32.mrf.mxu1  ;;  %v3780_v27 = vor.u32 %v4409_v19, %v3777_v20 }
  0xca   :  { %1796 = vmatpush.bf16.msra.mxu1 %v3588_v28  ;;  %1762 = vmatmul.bf16.vlgmr.msrb.gmra.mxu2 %v4688_v11  ;;  %v3665_v11 = vld [vmem:[#allocation2 + $0x598] sm:$0xf0]  ;;  %v1526_v14 = vadd.f32 %v1525_v57, %v1512_v5 }
  0xcb   :  { %1810 = vmatpush.bf16.msra.mxu2 %v3716_v29  ;;  %1776 = vmatmul.bf16.vlgmr.msrb.gmra.mxu3 %v4678_v0  ;;  %v4413_v0 = vld [vmem:[#allocation2 + $0x68c] sm:$0xf]  ;;  %v3668_v8 = vor.u32 %v4381_v2, %v3665_v11  ;;  %v3505_v29 = vld [vmem:[#allocation2 + $0x458] sm:$0xf0] }
  0xcc   :  { %1824 = vmatpush.bf16.msra.mxu3 %v3844_v33  ;;  %v3796_v13 = vor.u32 %v4413_v0, %v3793_v4  ;;  %v3601_v2 = vld [vmem:[#allocation2 + $0x518] sm:$0xf0] }
  0xcd   :  { %1783 = vmatpush.bf16.msra.mxu0 %v3444_v40  ;;  %v1539_v28 = vpop.f32.mrf.mxu2  ;;  %v1513_v33 = vpop.f32.mrf.mxu0  ;;  %v3508_v40 = vor.u32 %v4341_v26, %v3505_v29  ;;  %v3729_v0 = vld [vmem:[#allocation2 + $0x618] sm:$0xf0]  ;;  %v3604_v57 = vor.u32 %v4365_v1, %v3601_v2 }
  0xce   :  { %1797 = vmatpush.bf16.msra.mxu1 %v3572_v44  ;;  %v4749_v32 = vadd.f32 %v1539_v28, %v1526_v14  ;;  %v1514_v36 = vadd.f32 %v1513_v33, %v4742_v49  ;;  %v4305_v44 = vld [vmem:[#allocation2 + $0x32c] sm:$0xf] }
  0xcf   :  { %1811 = vmatpush.bf16.msra.mxu2 %v3700_v45  ;;  %v3361_v45 = vld [vmem:[#allocation2 + $0x338] sm:$0xf0] }
  0xd0   :  { %1825 = vmatpush.bf16.msra.mxu3 %v3828_v50  ;;  %v3489_v50 = vld [vmem:[#allocation2 + $0x438] sm:$0xf0]  ;;  %v3364_v55 = vor.u32 %v4305_v44, %v3361_v45 }
  0xd1   :  { %1784 = vmatpush.bf16.msra.mxu0 %v3428_v56  ;;  %v1527_v39 = vpop.f32.mrf.mxu1  ;;  %v3492_v49 = vor.u32 %v4337_v46, %v3489_v50  ;;  %v3620_v56 = vor.u32 %v4369_v51, %v3617_v52 }
  0xd2   :  { %1798 = vmatpush.bf16.msra.mxu1 %v3556_v58  ;;  %v1528_v48 = vadd.f32 %v1527_v39, %v1514_v36  ;;  %v4301_v58 = vld [vmem:[#allocation2 + $0x30c] sm:$0xf] }
  0xd3   :  { %1812 = vmatpush.bf16.msra.mxu2 %v3684_v59  ;;  %v3345_v59 = vld [vmem:[#allocation2 + $0x318] sm:$0xf0] }
  0xd4   :  { %1826 = vmatpush.bf16.msra.mxu3 %v3812_v63  ;;  %v3473_v63 = vld [vmem:[#allocation2 + $0x418] sm:$0xf0]  ;;  %v3348_v4 = vor.u32 %v4301_v58, %v3345_v59 }
  0xd5   :  { %1785 = vmatpush.bf16.msra.mxu0 %v3412_v6  ;;  %v1541_v62 = vpop.f32.mrf.mxu2  ;;  %v3476_v6 = vor.u32 %v4333_v60, %v3473_v63 }
  0xd6   :  { %1799 = vmatpush.bf16.msra.mxu1 %v3540_v7  ;;  %v1542_v11 = vadd.f32 %v1541_v62, %v1528_v48  ;;  %v3732_v7 = vor.u32 %v4397_v3, %v3729_v0 }
  0xd7   :  { %1813 = vmatpush.bf16.msra.mxu2 %v3668_v8  ;;  %v1553_v8 = vpop.f32.mrf.mxu3 }
  0xd8   :  { %1827 = vmatpush.bf16.msra.mxu3 %v3796_v13  ;;  %v1838_v5 = vadd.f32 %v1542_v11, %v4749_v32 }
  0xd9   :  { %1786 = vmatpush.bf16.msra.mxu0 %v3396_v21 }
  0xda   :  { %1800 = vmatpush.bf16.msra.mxu1 %v3524_v15  ;;  %v1839_v9 = vrot.slane %v1838_v5, 4 }
  0xdb   :  { %1814 = vmatpush.bf16.msra.mxu2 %v3652_v22 }
  0xdc   :  { %1828 = vmatpush.bf16.msra.mxu3 %v3780_v27  ;;  %v1840_v10 = vadd.f32 %v1839_v9, %v1838_v5 }
  0xdd   :  { %1787 = vmatpush.bf16.msra.mxu0 %v3380_v38 }
  0xde   :  { %1801 = vmatpush.bf16.msra.mxu1 %v3508_v40  ;;  %v1841_v12 = vrot.slane %v1840_v10, 2 }
  0xdf   :  { %1815 = vmatpush.bf16.msra.mxu2 %v3636_v43  ;;  %v1555_v16 = vpop.f32.mrf.mxu3 }
  0xe0   :  { %1829 = vmatpush.bf16.msra.mxu3 %v3764_v47  ;;  %v1842_v13 = vadd.f32 %v1841_v12, %v1840_v10 }
  0xe1   :  { %1788 = vmatpush.bf16.msra.mxu0 %v3364_v55 }
  0xe2   :  { %1802 = vmatpush.bf16.msra.mxu1 %v3492_v49  ;;  %v1843_v14 = vrot.slane %v1842_v13, 1 }
  0xe3   :  { %1816 = vmatpush.bf16.msra.mxu2 %v3620_v56 }
  0xe4   :  { %1830 = vmatpush.bf16.msra.mxu3 %v3748_v61  ;;  %v1844_v17 = vadd.f32 %v1843_v14, %v1842_v13 }
  0xe5   :  { %1789 = vmatpush.bf16.msra.mxu0 %v3348_v4  ;;  %v1567_v18 = vpop.f32.mrf.mxu0 }
  0xe6   :  { %1803 = vmatpush.bf16.msra.mxu1 %v3476_v6  ;;  %v1568_v19 = vadd.f32 %v1567_v18, %v1553_v8  ;;  %v1866_v20 = vmul.f32 0.0625, %v1844_v17  ;;  %v1581_v21 = vpop.f32.mrf.mxu1 }
  0xe7   :  { %1817 = vmatpush.bf16.msra.mxu2 %v3604_v57 }
  0xe8   :  { %1831 = vmatpush.bf16.msra.mxu3 %v3732_v7  ;;  %1790 = vmatmul.bf16.vlgmr.msra.gmra.mxu0 %v4697_v23  ;;  %v1582_v15 = vadd.f32 %v1581_v21, %v1568_v19  ;;  %v4758_v22 = vsub.f32 %v4749_v32, %v1866_v20  ;;  %v4760_v24 = vsub.f32 %v1542_v11, %v1866_v20 }
  0xe9   :  { %1804 = vmatmul.bf16.vlgmr.msra.gmra.mxu1 %v4718_v37 }
  0xea   :  { %1818 = vmatmul.bf16.vlgmr.msra.gmra.mxu2 %v4722_v42  ;;  %v1878_v23 = vmul.f32 %v4758_v22, %v4758_v22  ;;  %v1882_v37 = vmul.f32 %v4760_v24, %v4760_v24 }
  0xeb   :  { %1832 = vmatmul.bf16.vlgmr.msra.gmra.mxu3 %v4720_v41 }
  0xec   :  { %v1886_v42 = vadd.f32 %v1882_v37, %v1878_v23 }
  0xed   :  { %v1595_v41 = vpop.f32.mrf.mxu2  ;;  %v1569_v28 = vpop.f32.mrf.mxu0 }
  0xee   :  { %v1596_v25 = vadd.f32 %v1595_v41, %v1582_v15  ;;  %v1609_v26 = vpop.f32.mrf.mxu3  ;;  %v1583_v29 = vpop.f32.mrf.mxu1  ;;  %v1570_v30 = vadd.f32 %v1569_v28, %v1555_v16  ;;  %v1887_v43 = vrot.slane %v1886_v42, 4 }
  0xf0   :  { %v1610_v27 = vadd.f32 %v1609_v26, %v1596_v25  ;;  %v1584_v32 = vadd.f32 %v1583_v29, %v1570_v30  ;;  %v1888_v48 = vadd.f32 %v1887_v43, %v1886_v42 }
  0xf2   :  { %v1889_v52 = vrot.slane %v1888_v48, 2 }
  0xf4   :  { %v1890_v55 = vadd.f32 %v1889_v52, %v1888_v48 }
  0xf5   :  { %v1597_v31 = vpop.f32.mrf.mxu2 }
  0xf6   :  { %v1598_v35 = vadd.f32 %v1597_v31, %v1584_v32  ;;  %v1611_v36 = vpop.f32.mrf.mxu3  ;;  %v1891_v58 = vrot.slane %v1890_v55, 1 }
  0xf8   :  { %v1612_v38 = vadd.f32 %v1611_v36, %v1598_v35  ;;  %v1892_v61 = vadd.f32 %v1891_v58, %v1890_v55 }
  0xfa   :  { %v1914_v3 = vmul.f32 0.0625, %v1892_v61 }
  0xfc   :  { %v1919_v6 = vadd.f32 1e-05, %v1914_v3 }
  0xfe   :  { %4524 = vrsqrt.f32 %v1919_v6  ;;  %vm1929_vm4 = vweird.f32 %v1919_v6 }
 0x104   :  { %v4525_v16 = vpop.eup %4524 }
 0x105   :  { %v1623_v33 = vpop.f32.mrf.mxu0  ;;  %v1924_v20 = vmul.f32 %v4525_v16, %v1919_v6  ;;  %vm1930_vm1 = vweird.f32 %v4525_v16 }
 0x106   :  { %v1637_v34 = vpop.f32.mrf.mxu1  ;;  %v1624_v39 = vadd.f32 %v1623_v33, %v1610_v27  ;;  %vm1931_vm6 = vmor %vm1929_vm4, %vm1930_vm1 }
 0x107   :  { %v1925_v37 = vmul.f32 %v4525_v16, %v1924_v20 }
 0x108   :  { %v1638_v46 = vadd.f32 %v1637_v34, %v1624_v39 }
 0x109   :  { %v1926_v28 = vmul.f32 0.5, %v1925_v37 }
 0x10b   :  { %v1927_v36 = vsub.f32 1.5, %v1926_v28 }
 0x10d   :  { %v1625_v40 = vpop.f32.mrf.mxu0  ;;  %v1651_v1 = vpop.f32.mrf.mxu2 }
 0x10e   :  { %v1626_v44 = vadd.f32 %v1625_v40, %v1612_v38  ;;  %v1639_v45 = vpop.f32.mrf.mxu1  ;;  %v1665_v4 = vpop.f32.mrf.mxu3 }
 0x10f   :  { %v1666_v15 = vadd.f32 %v1665_v4, %v1651_v1 }
 0x110   :  { %v1640_v47 = vadd.f32 %v1639_v45, %v1626_v44  ;;  %v1928_v45 = vmul.f32 %v4525_v16, %v1927_v36  ;;  %v4475_v36 = vld [vmem:[%s5341_s4 + $0x174] sm:$0xf0] }
 0x112   :  { %v1845_v50 = vadd.f32 %v1640_v47, %v1638_v46  ;;  %v1932_v55 = vsel %vm1931_vm6, %v4525_v16, %v1928_v45 }
 0x114   :  { %v1846_v51 = vrot.slane %v1845_v50, 4 }
 0x115   :  { %v1653_v8 = vpop.f32.mrf.mxu2 }
 0x116   :  { %v1847_v53 = vadd.f32 %v1846_v51, %v1845_v50  ;;  %v1667_v13 = vpop.f32.mrf.mxu3 }
 0x117   :  { %v1668_v42 = vadd.f32 %v1667_v13, %v1653_v8 }
 0x118   :  { %v1848_v54 = vrot.slane %v1847_v53, 2 }
 0x11a   :  { %v1849_v49 = vadd.f32 %v1848_v54, %v1847_v53 }
 0x11c   :  { %v1850_v56 = vrot.slane %v1849_v49, 1 }
 0x11e   :  { %v1851_v59 = vadd.f32 %v1850_v56, %v1849_v49 }
 0x120   :  { %v1867_v60 = vmul.f32 0.0625, %v1851_v59 }
 0x122   :  { %v4766_v62 = vsub.f32 %v1638_v46, %v1867_v60  ;;  %v4768_v63 = vsub.f32 %v1640_v47, %v1867_v60 }
 0x124   :  { %v1879_v2 = vmul.f32 %v4766_v62, %v4766_v62  ;;  %v1883_v11 = vmul.f32 %v4768_v63, %v4768_v63 }
 0x125   :  { %v1679_v10 = vpop.f32.mrf.mxu0 }
 0x126   :  { %v1893_v0 = vadd.f32 %v1883_v11, %v1879_v2  ;;  %v1693_v18 = vpop.f32.mrf.mxu1  ;;  %v1680_v25 = vadd.f32 %v1679_v10, %v1666_v15 }
 0x128   :  { %v1894_v5 = vrot.slane %v1893_v0, 4  ;;  %v1694_v31 = vadd.f32 %v1693_v18, %v1680_v25 }
 0x12a   :  { %v1895_v57 = vadd.f32 %v1894_v5, %v1893_v0 }
 0x12c   :  { %v1896_v7 = vrot.slane %v1895_v57, 2 }
 0x12d   :  { %v1707_v21 = vpop.f32.mrf.mxu2  ;;  %v1681_v23 = vpop.f32.mrf.mxu0 }
 0x12e   :  { %v1897_v9 = vadd.f32 %v1896_v7, %v1895_v57  ;;  %v1721_v41 = vpop.f32.mrf.mxu3  ;;  %v1682_v27 = vadd.f32 %v1681_v23, %v1668_v42  ;;  %v1695_v30 = vpop.f32.mrf.mxu1  ;;  %v1708_v39 = vadd.f32 %v1707_v21, %v1694_v31  ;;  %v3967_v31 = vld [vmem:[%s5341_s4 + $0xf0] sm:$0xf] }
 0x130   :  { %v1898_v12 = vrot.slane %v1897_v9, 1  ;;  %v1696_v35 = vadd.f32 %v1695_v30, %v1682_v27  ;;  %v1722_v47 = vadd.f32 %v1721_v41, %v1708_v39  ;;  %v4443_v30 = vld [vmem:[%s5341_s4 + $0x74] sm:$0xf0] }
 0x132   :  { %v1899_v14 = vadd.f32 %v1898_v12, %v1897_v9 }
 0x134   :  { %v1915_v17 = vmul.f32 0.0625, %v1899_v14 }
 0x135   :  { %v1709_v32 = vpop.f32.mrf.mxu2 }
 0x136   :  { %v1920_v19 = vadd.f32 1e-05, %v1915_v17  ;;  %v1710_v40 = vadd.f32 %v1709_v32, %v1696_v35  ;;  %v1723_v44 = vpop.f32.mrf.mxu3  ;;  %v4031_v35 = vld [vmem:[%s5341_s4 + $0x170] sm:$0xf] }
 0x138   :  { %4526 = vrsqrt.f32 %v1920_v19  ;;  %vm1939_vm2 = vweird.f32 %v1920_v19  ;;  %v1724_v48 = vadd.f32 %v1723_v44, %v1710_v40  ;;  %v4032_v40 = vor.u32 %v4475_v36, %v4031_v35  ;;  %v4491_v44 = vld [vmem:[%s5341_s4 + $0x1f4] sm:$0xf0]  ;;  %v3871_v35 = vld [vmem:[%s5341_s4 + $0x30] sm:$0xf] }
 0x139   :  { %v4435_v36 = vld [vmem:[%s5341_s4 + $0x34] sm:$0xf0] }
 0x13a   :  { %2437 = vmatpush.bf16.msrb.mxu2 %v4032_v40  ;;  %v4451_v40 = vld [vmem:[%s5341_s4 + $0xb4] sm:$0xf0] }
 0x13e   :  { %v4527_v26 = vpop.eup %4526 }
 0x13f   :  { %v1934_v29 = vmul.f32 %v4527_v26, %v1920_v19  ;;  %vm1940_vm0 = vweird.f32 %v4527_v26 }
 0x140   :  { %vm1941_vm3 = vmor %vm1939_vm2, %vm1940_vm0 }
 0x141   :  { %v1935_v33 = vmul.f32 %v4527_v26, %v1934_v29  ;;  %v3903_v29 = vld [vmem:[%s5341_s4 + $0x70] sm:$0xf] }
 0x142   :  { %v3904_v32 = vor.u32 %v4443_v30, %v3903_v29  ;;  %v4071_v29 = vld [vmem:[%s5341_s4 + $0x1c0] sm:$0xf] }
 0x143   :  { %v1936_v38 = vmul.f32 0.5, %v1935_v33 }
 0x144   :  { %2409 = vmatpush.bf16.msrb.mxu0 %v3904_v32 }
 0x145   :  { %v1735_v34 = vpop.f32.mrf.mxu0  ;;  %v1937_v43 = vsub.f32 1.5, %v1936_v38 }
 0x146   :  { %v1736_v53 = vadd.f32 %v1735_v34, %v1722_v47  ;;  %v1749_v59 = vpop.f32.mrf.mxu1  ;;  %v4459_v34 = vld [vmem:[%s5341_s4 + $0xf4] sm:$0xf0] }
 0x147   :  { %v1938_v46 = vmul.f32 %v4527_v26, %v1937_v43  ;;  %v3968_v39 = vor.u32 %v4459_v34, %v3967_v31  ;;  %v4095_v43 = vld [vmem:[%s5341_s4 + $0x1f0] sm:$0xf]  ;;  %v4485_v31 = vld [vmem:[%s5341_s4 + $0x1c4] sm:$0xf0] }
 0x148   :  { %v4072_v34 = vor.u32 %v4485_v31, %v4071_v29  ;;  %v3975_v29 = vld [vmem:[%s5341_s4 + $0x100] sm:$0xf] }
 0x149   :  { %v1942_v50 = vsel %vm1941_vm3, %v4527_v26, %v1938_v46  ;;  %v4096_v46 = vor.u32 %v4491_v44, %v4095_v43  ;;  %2423 = vmatpush.bf16.msrb.mxu1 %v3968_v39  ;;  %v3935_v39 = vld [vmem:[%s5341_s4 + $0xb0] sm:$0xf] }
 0x14a   :  { %v1967_v52 = vrot.slane %v1942_v50, 7  ;;  %v3936_v44 = vor.u32 %v4451_v40, %v3935_v39 }
 0x14b   :  { %2451 = vmatpush.bf16.msrb.mxu3 %v4096_v46  ;;  %v4467_v46 = vld [vmem:[%s5341_s4 + $0x134] sm:$0xf0] }
 0x14c   :  { %v4775_v56 = vsel %vm1970_vm5, %v1932_v55, %v1967_v52  ;;  %v4441_v52 = vld [vmem:[%s5341_s4 + $0x64] sm:$0xf0] }
 0x14d   :  { %v1737_v51 = vpop.f32.mrf.mxu0  ;;  %v1763_v1 = vpop.f32.mrf.mxu2  ;;  %v4457_v55 = vld [vmem:[%s5341_s4 + $0xe4] sm:$0xf0] }
 0x14e   :  { %v1738_v54 = vadd.f32 %v1737_v51, %v1724_v48  ;;  %v1777_v11 = vpop.f32.mrf.mxu3  ;;  %v1751_v4 = vpop.f32.mrf.mxu1  ;;  %v1764_v13 = vadd.f32 %v1763_v1, %v1749_v59  ;;  %v3895_v51 = vld [vmem:[%s5341_s4 + $0x60] sm:$0xf]  ;;  %v4489_v1 = vld [vmem:[%s5341_s4 + $0x1e4] sm:$0xf0] }
 0x150   :  { %v1852_v49 = vadd.f32 %v1738_v54, %v1736_v53  ;;  %v1778_v18 = vadd.f32 %v1777_v11, %v1764_v13  ;;  %v4015_v13 = vld [vmem:[%s5341_s4 + $0x150] sm:$0xf] }
 0x152   :  { %v1853_v58 = vrot.slane %v1852_v49, 4 }
 0x154   :  { %v1854_v60 = vadd.f32 %v1853_v58, %v1852_v49  ;;  %v4023_v49 = vld [vmem:[%s5341_s4 + $0x160] sm:$0xf] }
 0x155   :  { %v1765_v7 = vpop.f32.mrf.mxu2 }
 0x156   :  { %v1855_v61 = vrot.slane %v1854_v60, 2  ;;  %v1779_v8 = vpop.f32.mrf.mxu3  ;;  %v1766_v16 = vadd.f32 %v1765_v7, %v1751_v4  ;;  %v3887_v4 = vld [vmem:[%s5341_s4 + $0x50] sm:$0xf] }
 0x157   :  { %v3951_v7 = vld [vmem:[%s5341_s4 + $0xd0] sm:$0xf] }
 0x158   :  { %v1856_v2 = vadd.f32 %v1855_v61, %v1854_v60  ;;  %v1780_v20 = vadd.f32 %v1779_v8, %v1766_v16  ;;  %v4473_v60 = vld [vmem:[%s5341_s4 + $0x164] sm:$0xf0]  ;;  %v4087_v61 = vld [vmem:[%s5341_s4 + $0x1e0] sm:$0xf]  ;;  %v4455_v8 = vld [vmem:[%s5341_s4 + $0xd4] sm:$0xf0] }
 0x159   :  { %v4088_v11 = vor.u32 %v4489_v1, %v4087_v61  ;;  %v4079_v16 = vld [vmem:[%s5341_s4 + $0x1d0] sm:$0xf]  ;;  %v4449_v61 = vld [vmem:[%s5341_s4 + $0xa4] sm:$0xf0]  ;;  %v3991_v1 = vld [vmem:[%s5341_s4 + $0x120] sm:$0xf] }
 0x15a   :  { %v1857_v3 = vrot.slane %v1856_v2, 1 }
 0x15b   :  { %2452 = vmatpush.bf16.msrb.mxu3 %v4088_v11 }
 0x15c   :  { %v1858_v0 = vadd.f32 %v1857_v3, %v1856_v2  ;;  %v4024_v2 = vor.u32 %v4473_v60, %v4023_v49  ;;  %v3863_v49 = vld [vmem:[%s5341_s4 + $0x20] sm:$0xf] }
 0x15d   :  { %v3927_v60 = vld [vmem:[%s5341_s4 + $0xa0] sm:$0xf] }
 0x15e   :  { %v1868_v5 = vmul.f32 0.0625, %v1858_v0  ;;  %2438 = vmatpush.bf16.msrb.mxu2 %v4024_v2 }
 0x160   :  { %v4777_v6 = vsub.f32 %v1736_v53, %v1868_v5  ;;  %v4779_v57 = vsub.f32 %v1738_v54, %v1868_v5  ;;  %v3896_v53 = vor.u32 %v4441_v52, %v3895_v51  ;;  %v3959_v54 = vld [vmem:[%s5341_s4 + $0xe0] sm:$0xf]  ;;  %v4439_v5 = vld [vmem:[%s5341_s4 + $0x54] sm:$0xf0] }
 0x161   :  { %v3960_v59 = vor.u32 %v4457_v55, %v3959_v54  ;;  %v4483_v52 = vld [vmem:[%s5341_s4 + $0x1b4] sm:$0xf0] }
 0x162   :  { %v1880_v10 = vmul.f32 %v4777_v6, %v4777_v6  ;;  %v1884_v12 = vmul.f32 %v4779_v57, %v4779_v57  ;;  %2410 = vmatpush.bf16.msrb.mxu0 %v3896_v53 }
 0x163   :  { %2424 = vmatpush.bf16.msrb.mxu1 %v3960_v59 }
 0x164   :  { %v1900_v17 = vadd.f32 %v1884_v12, %v1880_v10  ;;  %v3888_v10 = vor.u32 %v4439_v5, %v3887_v4  ;;  %v3952_v12 = vor.u32 %v4455_v8, %v3951_v7  ;;  %v4055_v4 = vld [vmem:[%s5341_s4 + $0x1a0] sm:$0xf]  ;;  %v4481_v5 = vld [vmem:[%s5341_s4 + $0x1a4] sm:$0xf0] }
 0x165   :  { %v1791_v9 = vpop.f32.mrf.mxu0 }
 0x166   :  { %v1805_v14 = vpop.f32.mrf.mxu1  ;;  %v1792_v21 = vadd.f32 %v1791_v9, %v1778_v18  ;;  %v1901_v37 = vrot.slane %v1900_v17, 4  ;;  %v4487_v18 = vld [vmem:[%s5341_s4 + $0x1d4] sm:$0xf0]  ;;  %2411 = vmatpush.bf16.msrb.mxu0 %v3888_v10  ;;  %v3855_v10 = vld [vmem:[%s5341_s4 + $0x10] sm:$0xf] }
 0x167   :  { %2425 = vmatpush.bf16.msrb.mxu1 %v3952_v12  ;;  %v4431_v12 = vld [vmem:[%s5341_s4 + $0x14] sm:$0xf0] }
 0x168   :  { %v1806_v42 = vadd.f32 %v1805_v14, %v1792_v21  ;;  %v1902_v26 = vadd.f32 %v1901_v37, %v1900_v17  ;;  %v4471_v14 = vld [vmem:[%s5341_s4 + $0x154] sm:$0xf0]  ;;  %v4080_v21 = vor.u32 %v4487_v18, %v4079_v16 }
 0x169   :  { %v4016_v17 = vor.u32 %v4471_v14, %v4015_v13  ;;  %v3856_v13 = vor.u32 %v4431_v12, %v3855_v10  ;;  %v3919_v14 = vld [vmem:[%s5341_s4 + $0x90] sm:$0xf]  ;;  %v4447_v16 = vld [vmem:[%s5341_s4 + $0x94] sm:$0xf0]  ;;  %v4089_v10 = vld [vmem:[%s5341_s4 + $0x1e8] sm:$0xf0] }
 0x16a   :  { %v1903_v47 = vrot.slane %v1902_v26, 2  ;;  %2453 = vmatpush.bf16.msrb.mxu3 %v4080_v21  ;;  %v4047_v21 = vld [vmem:[%s5341_s4 + $0x190] sm:$0xf]  ;;  %v4438_v12 = vld [vmem:[%s5341_s4 + $0x54] sm:$0xf] }
 0x16b   :  { %2439 = vmatpush.bf16.msrb.mxu2 %v4016_v17  ;;  %v3983_v17 = vld [vmem:[%s5341_s4 + $0x110] sm:$0xf] }
 0x16c   :  { %v1904_v3 = vadd.f32 %v1903_v47, %v1902_v26  ;;  %v4063_v47 = vld [vmem:[%s5341_s4 + $0x1b0] sm:$0xf] }
 0x16d   :  { %v1819_v19 = vpop.f32.mrf.mxu2  ;;  %v1793_v23 = vpop.f32.mrf.mxu0  ;;  %v4064_v55 = vor.u32 %v4483_v52, %v4063_v47  ;;  %v4474_v47 = vld [vmem:[%s5341_s4 + $0x174] sm:$0xf] }
 0x16e   :  { %v1833_v15 = vpop.f32.mrf.mxu3  ;;  %v1794_v41 = vadd.f32 %v1793_v23, %v1780_v20  ;;  %v1807_v25 = vpop.f32.mrf.mxu1  ;;  %v1820_v27 = vadd.f32 %v1819_v19, %v1806_v42  ;;  %v1905_v19 = vrot.slane %v1904_v3, 1  ;;  %v4437_v23 = vld [vmem:[%s5341_s4 + $0x44] sm:$0xf0]  ;;  %2454 = vmatpush.bf16.msrb.mxu3 %v4072_v34  ;;  %v4490_v52 = vld [vmem:[%s5341_s4 + $0x1f4] sm:$0xf] }
 0x16f   :  { %v4453_v42 = vld [vmem:[%s5341_s4 + $0xc4] sm:$0xf0] }
 0x170   :  { %v1808_v28 = vadd.f32 %v1807_v25, %v1794_v41  ;;  %v4809_v48 = vadd.f32 %v1833_v15, %v1820_v27  ;;  %v3879_v15 = vld [vmem:[%s5341_s4 + $0x40] sm:$0xf] }
 0x171   :  { %v3880_v37 = vor.u32 %v4437_v23, %v3879_v15  ;;  %v3943_v41 = vld [vmem:[%s5341_s4 + $0xc0] sm:$0xf]  ;;  %v4479_v15 = vld [vmem:[%s5341_s4 + $0x194] sm:$0xf0] }
 0x172   :  { %v4007_v25 = vld [vmem:[%s5341_s4 + $0x140] sm:$0xf]  ;;  %v3944_v27 = vor.u32 %v4453_v42, %v3943_v41  ;;  %2455 = vmatpush.bf16.msrb.mxu3 %v4064_v55 }
 0x173   :  { %2412 = vmatpush.bf16.msrb.mxu0 %v3880_v37  ;;  %v4048_v37 = vor.u32 %v4479_v15, %v4047_v21  ;;  %v3847_v42 = vld [vmem:[%s5341_s4] sm:$0xf]  ;;  %v4470_v21 = vld [vmem:[%s5341_s4 + $0x154] sm:$0xf]  ;;  %v4017_v15 = vld [vmem:[%s5341_s4 + $0x158] sm:$0xf0] }
 0x174   :  { %2426 = vmatpush.bf16.msrb.mxu1 %v3944_v27  ;;  %v3911_v27 = vld [vmem:[%s5341_s4 + $0x80] sm:$0xf] }
 0x175   :  { %v1821_v33 = vpop.f32.mrf.mxu2 }
 0x176   :  { %v1822_v38 = vadd.f32 %v1821_v33, %v1808_v28  ;;  %v1835_v45 = vpop.f32.mrf.mxu3  ;;  %v4469_v28 = vld [vmem:[%s5341_s4 + $0x144] sm:$0xf0]  ;;  %v1906_v33 = vadd.f32 %v1905_v19, %v1904_v3  ;;  %v3928_v3 = vor.u32 %v4449_v61, %v3927_v60  ;;  %v3920_v19 = vor.u32 %v4447_v16, %v3919_v14 }
 0x177   :  { %v4008_v30 = vor.u32 %v4469_v28, %v4007_v25  ;;  %v4429_v25 = vld [vmem:[%s5341_s4 + $0x4] sm:$0xf0] }
 0x178   :  { %v4811_v50 = vadd.f32 %v1835_v45, %v1822_v38  ;;  %v3872_v38 = vor.u32 %v4435_v36, %v3871_v35  ;;  %v3999_v45 = vld [vmem:[%s5341_s4 + $0x130] sm:$0xf]  ;;  %v1916_v53 = vmul.f32 0.0625, %v1906_v33  ;;  %2427 = vmatpush.bf16.msrb.mxu1 %v3936_v44  ;;  %v4445_v28 = vld [vmem:[%s5341_s4 + $0x84] sm:$0xf0] }
 0x179   :  { %2440 = vmatpush.bf16.msrb.mxu2 %v4008_v30  ;;  %v4000_v51 = vor.u32 %v4467_v46, %v3999_v45  ;;  %v3912_v31 = vor.u32 %v4445_v28, %v3911_v27  ;;  %v4461_v33 = vld [vmem:[%s5341_s4 + $0x104] sm:$0xf0]  ;;  %v4442_v36 = vld [vmem:[%s5341_s4 + $0x74] sm:$0xf]  ;;  %v3969_v45 = vld [vmem:[%s5341_s4 + $0xf8] sm:$0xf0] }
 0x17a   :  { %v1859_v58 = vadd.f32 %v4811_v50, %v4809_v48  ;;  %2413 = vmatpush.bf16.msrb.mxu0 %v3872_v38  ;;  %v4941_v8 = vadd.f32 1e-05, %v1916_v53  ;;  %v3976_v34 = vor.u32 %v4461_v33, %v3975_v29  ;;  %v4477_v35 = vld [vmem:[%s5341_s4 + $0x184] sm:$0xf0]  ;;  %v3905_v38 = vld [vmem:[%s5341_s4 + $0x78] sm:$0xf0] }
 0x17b   :  { %v4458_v44 = vld [vmem:[%s5341_s4 + $0xf4] sm:$0xf]  ;;  %v4436_v27 = vld [vmem:[%s5341_s4 + $0x44] sm:$0xf]  ;;  %v3881_v28 = vld [vmem:[%s5341_s4 + $0x48] sm:$0xf0] }
 0x17c   :  { %v1860_v0 = vrot.slane %v1859_v58, 4  ;;  %2428 = vmatpush.bf16.msrb.mxu1 %v3928_v3  ;;  %4528 = vrsqrt.f32 %v4941_v8  ;;  %v3972_v46 = vor.u32 %v4458_v44, %v3969_v45  ;;  %v3961_v3 = vld [vmem:[%s5341_s4 + $0xe8] sm:$0xf0]  ;;  %v4452_v29 = vld [vmem:[%s5341_s4 + $0xc4] sm:$0xf]  ;;  %vm1949_vm8 = vweird.f32 %v4941_v8 }
 0x17d   :  { %2441 = vmatpush.bf16.msrb.mxu2 %v4000_v51  ;;  %v4033_v51 = vld [vmem:[%s5341_s4 + $0x178] sm:$0xf0]  ;;  %v3945_v33 = vld [vmem:[%s5341_s4 + $0xc8] sm:$0xf0]  ;;  %v4434_v44 = vld [vmem:[%s5341_s4 + $0x34] sm:$0xf] }
 0x17e   :  { %v1861_v9 = vadd.f32 %v1860_v0, %v1859_v58  ;;  %v4433_v58 = vld [vmem:[%s5341_s4 + $0x24] sm:$0xf0]  ;;  %v4036_v55 = vor.u32 %v4474_v47, %v4033_v51  ;;  %v3873_v45 = vld [vmem:[%s5341_s4 + $0x38] sm:$0xf0]  ;;  %v4450_v47 = vld [vmem:[%s5341_s4 + $0xb4] sm:$0xf] }
 0x17f   :  { %v3864_v59 = vor.u32 %v4433_v58, %v3863_v49  ;;  %v4465_v0 = vld [vmem:[%s5341_s4 + $0x124] sm:$0xf0]  ;;  %v4097_v49 = vld [vmem:[%s5341_s4 + $0x1f8] sm:$0xf0]  ;;  %v4440_v58 = vld [vmem:[%s5341_s4 + $0x64] sm:$0xf] }
 0x180   :  { %v1862_v20 = vrot.slane %v1861_v9, 2  ;;  %v3992_v7 = vor.u32 %v4465_v0, %v3991_v1  ;;  %2429 = vmatpush.bf16.msrb.mxu1 %v3920_v19  ;;  %v4100_v60 = vor.u32 %v4490_v52, %v4097_v49  ;;  %v4456_v1 = vld [vmem:[%s5341_s4 + $0xe4] sm:$0xf]  ;;  %v3953_v19 = vld [vmem:[%s5341_s4 + $0xd8] sm:$0xf0] }
 0x181   :  { %2414 = vmatpush.bf16.msrb.mxu0 %v3864_v59  ;;  %v3897_v59 = vld [vmem:[%s5341_s4 + $0x68] sm:$0xf0]  ;;  %v4472_v0 = vld [vmem:[%s5341_s4 + $0x164] sm:$0xf]  ;;  %v3937_v51 = vld [vmem:[%s5341_s4 + $0xb8] sm:$0xf0] }
 0x182   :  { %v1863_v26 = vadd.f32 %v1862_v20, %v1861_v9  ;;  %2442 = vmatpush.bf16.msrb.mxu2 %v3992_v7  ;;  %v4463_v20 = vld [vmem:[%s5341_s4 + $0x114] sm:$0xf0]  ;;  %v5017_v53 = vpop.eup %4528  ;;  %v3900_v61 = vor.u32 %v4440_v58, %v3897_v59  ;;  %v4025_v7 = vld [vmem:[%s5341_s4 + $0x168] sm:$0xf0]  ;;  %v4466_v52 = vld [vmem:[%s5341_s4 + $0x134] sm:$0xf] }
 0x183   :  { %v3984_v23 = vor.u32 %v4463_v20, %v3983_v17  ;;  %v4482_v49 = vld [vmem:[%s5341_s4 + $0x1b4] sm:$0xf]  ;;  %v4065_v58 = vld [vmem:[%s5341_s4 + $0x1b8] sm:$0xf0]  ;;  %vm1950_vm7 = vweird.f32 %v5017_v53 }
 0x184   :  { %v1864_v32 = vrot.slane %v1863_v26, 1  ;;  %2430 = vmatpush.bf16.msrb.mxu1 %v3912_v31  ;;  %v3884_v31 = vor.u32 %v4436_v27, %v3881_v28  ;;  %v4428_v28 = vld [vmem:[%s5341_s4 + $0x4] sm:$0xf]  ;;  %vm5196_vm10 = vmor %vm1949_vm8, %vm1950_vm7 }
 0x185   :  { %2415 = vmatpush.bf16.msrb.mxu0 %v3856_v13  ;;  %v3889_v13 = vld [vmem:[%s5341_s4 + $0x58] sm:$0xf0] }
 0x186   :  { %v1865_v43 = vadd.f32 %v1864_v32, %v1863_v26  ;;  %2443 = vmatpush.bf16.msrb.mxu2 %v3984_v23  ;;  %v3848_v26 = vor.u32 %v4429_v25, %v3847_v42  ;;  %v4039_v32 = vld [vmem:[%s5341_s4 + $0x180] sm:$0xf]  ;;  %v3892_v17 = vor.u32 %v4438_v12, %v3889_v13  ;;  %v4081_v42 = vld [vmem:[%s5341_s4 + $0x1d8] sm:$0xf0] }
 0x187   :  { %v4040_v40 = vor.u32 %v4477_v35, %v4039_v32  ;;  %v4468_v32 = vld [vmem:[%s5341_s4 + $0x144] sm:$0xf]  ;;  %v4009_v35 = vld [vmem:[%s5341_s4 + $0x148] sm:$0xf0] }
 0x188   :  { %v1869_v54 = vmul.f32 0.0625, %v1865_v43  ;;  %v3908_v43 = vor.u32 %v4442_v36, %v3905_v38  ;;  %2479 = vmatpush.bf16.msra.mxu1 %v3972_v46  ;;  %v4484_v36 = vld [vmem:[%s5341_s4 + $0x1c4] sm:$0xf]  ;;  %v4073_v38 = vld [vmem:[%s5341_s4 + $0x1c8] sm:$0xf0]  ;;  %v3876_v46 = vor.u32 %v4434_v44, %v3873_v45 }
 0x189   :  { %2416 = vmatpush.bf16.msrb.mxu0 %v3848_v26 }
 0x18a   :  { %v4927_v2 = vsub.f32 %v4809_v48, %v1869_v54  ;;  %v4930_v11 = vsub.f32 %v4811_v50, %v1869_v54  ;;  %v4056_v48 = vor.u32 %v4481_v5, %v4055_v4  ;;  %2444 = vmatpush.bf16.msrb.mxu2 %v3976_v34  ;;  %v3964_v5 = vor.u32 %v4456_v1, %v3961_v3  ;;  %v4448_v1 = vld [vmem:[%s5341_s4 + $0xa4] sm:$0xf] }
 0x18b   :  { %v3948_v34 = vor.u32 %v4452_v29, %v3945_v33  ;;  %v4068_v3 = vor.u32 %v4482_v49, %v4065_v58  ;;  %v3849_v29 = vld [vmem:[%s5341_s4 + $0x8] sm:$0xf0]  ;;  %v4444_v33 = vld [vmem:[%s5341_s4 + $0x84] sm:$0xf]  ;;  %v1995_v49 = vld [vmem:[%s5340_s3] sm:$0xf] }
 0x18c   :  { %v1881_v50 = vmul.f32 %v4927_v2, %v4927_v2  ;;  %v1885_v9 = vmul.f32 %v4930_v11, %v4930_v11  ;;  %2456 = vmatpush.bf16.msrb.mxu3 %v4056_v48  ;;  %v4488_v48 = vld [vmem:[%s5341_s4 + $0x1e4] sm:$0xf]  ;;  %2480 = vmatpush.bf16.msra.mxu1 %v3964_v5  ;;  %v3993_v5 = vld [vmem:[%s5341_s4 + $0x128] sm:$0xf0] }
 0x18d   :  { %2465 = vmatpush.bf16.msra.mxu0 %v3908_v43  ;;  %v4092_v16 = vor.u32 %v4488_v48, %v4089_v10  ;;  %v4076_v43 = vor.u32 %v4484_v36, %v4073_v38  ;;  %v4460_v36 = vld [vmem:[%s5341_s4 + $0x104] sm:$0xf]  ;;  %v3977_v38 = vld [vmem:[%s5341_s4 + $0x108] sm:$0xf0] }
 0x18e   :  { %v1907_v18 = vadd.f32 %v1885_v9, %v1881_v50  ;;  %2493 = vmatpush.bf16.msra.mxu2 %v4036_v55  ;;  %v1944_v50 = vmul.f32 %v5017_v53, %v4941_v8  ;;  %v4028_v9 = vor.u32 %v4472_v0, %v4025_v7  ;;  %v4001_v55 = vld [vmem:[%s5341_s4 + $0x138] sm:$0xf0]  ;;  %v3929_v0 = vld [vmem:[%s5341_s4 + $0xa8] sm:$0xf0]  ;;  %v3852_v8 = vor.u32 %v4428_v28, %v3849_v29 }
 0x18f   :  { %v4004_v59 = vor.u32 %v4466_v52, %v4001_v55  ;;  %v3932_v13 = vor.u32 %v4448_v1, %v3929_v0 }
 0x190   :  { %v1908_v41 = vrot.slane %v1907_v18, 4  ;;  %2457 = vmatpush.bf16.msrb.mxu3 %v4048_v37  ;;  %v4020_v37 = vor.u32 %v4470_v21, %v4017_v15  ;;  %v1945_v25 = vmul.f32 %v5017_v53, %v1944_v50  ;;  %v4480_v50 = vld [vmem:[%s5341_s4 + $0x1a4] sm:$0xf]  ;;  %v4462_v15 = vld [vmem:[%s5341_s4 + $0x114] sm:$0xf] }
 0x191   :  { %2466 = vmatpush.bf16.msra.mxu0 %v3900_v61  ;;  %v3865_v61 = vld [vmem:[%s5341_s4 + $0x28] sm:$0xf0] }
 0x192   :  { %v1909_v30 = vadd.f32 %v1908_v41, %v1907_v18  ;;  %v4454_v18 = vld [vmem:[%s5341_s4 + $0xd4] sm:$0xf]  ;;  %2494 = vmatpush.bf16.msra.mxu2 %v4028_v9  ;;  %v4057_v9 = vld [vmem:[%s5341_s4 + $0x1a8] sm:$0xf0] }
 0x193   :  { %v3956_v20 = vor.u32 %v4454_v18, %v3953_v19  ;;  %v4486_v41 = vld [vmem:[%s5341_s4 + $0x1d4] sm:$0xf]  ;;  %v3921_v19 = vld [vmem:[%s5341_s4 + $0x98] sm:$0xf0]  ;;  %v4060_v21 = vor.u32 %v4480_v50, %v4057_v9 }
 0x194   :  { %v1910_v39 = vrot.slane %v1909_v30, 2  ;;  %2458 = vmatpush.bf16.msrb.mxu3 %v4040_v40  ;;  %v4084_v26 = vor.u32 %v4486_v41, %v4081_v42  ;;  %v1946_v40 = vmul.f32 0.5, %v1945_v25  ;;  %v4446_v18 = vld [vmem:[%s5341_s4 + $0x94] sm:$0xf]  ;;  %v4049_v42 = vld [vmem:[%s5341_s4 + $0x198] sm:$0xf0] }
 0x195   :  { %2467 = vmatpush.bf16.msra.mxu0 %v3892_v17  ;;  %2481 = vmatpush.bf16.msra.mxu1 %v3956_v20  ;;  %v4478_v41 = vld [vmem:[%s5341_s4 + $0x194] sm:$0xf]  ;;  %v3924_v27 = vor.u32 %v4446_v18, %v3921_v19 }
 0x196   :  { %v1911_v54 = vadd.f32 %v1910_v39, %v1909_v30  ;;  %2495 = vmatpush.bf16.msra.mxu2 %v4020_v37  ;;  %v4012_v39 = vor.u32 %v4468_v32, %v4009_v35  ;;  %v1947_v10 = vsub.f32 1.5, %v1946_v40  ;;  %v3913_v32 = vld [vmem:[%s5341_s4 + $0x88] sm:$0xf0]  ;;  %v4052_v35 = vor.u32 %v4478_v41, %v4049_v42  ;;  %v4476_v40 = vld [vmem:[%s5341_s4 + $0x184] sm:$0xf] }
 0x198   :  { %v1912_v4 = vrot.slane %v1911_v54, 1  ;;  %2507 = vmatpush.bf16.msra.mxu3 %v4100_v60  ;;  %v4432_v60 = vld [vmem:[%s5341_s4 + $0x24] sm:$0xf]  ;;  %v1948_v25 = vmul.f32 %v5017_v53, %v1947_v10 }
 0x199   :  { %2468 = vmatpush.bf16.msra.mxu0 %v3884_v31  ;;  %2482 = vmatpush.bf16.msra.mxu1 %v3948_v34  ;;  %v3868_v48 = vor.u32 %v4432_v60, %v3865_v61  ;;  %v2000_v60 = vperm.slane %v1995_v49, 3  ;;  %v1997_v61 = vperm.slane %v1995_v49, 0 }
 0x19a   :  { %v1913_v14 = vadd.f32 %v1912_v4, %v1911_v54  ;;  %v3940_v54 = vor.u32 %v4450_v47, %v3937_v51  ;;  %2496 = vmatpush.bf16.msra.mxu2 %v4012_v39  ;;  %v4464_v4 = vld [vmem:[%s5341_s4 + $0x124] sm:$0xf]  ;;  %v1952_v44 = vsel %vm5196_vm10, %v5017_v53, %v1948_v25  ;;  %v3980_v47 = vor.u32 %v4460_v36, %v3977_v38  ;;  %v1918_v53 = vld [vmem:[%s5339_s2] sm:$0xf] }
 0x19b   :  { %v3996_v17 = vor.u32 %v4464_v4, %v3993_v5  ;;  %v1998_v5 = vperm.slane %v1995_v49, 1 }
 0x19c   :  { %v1917_v23 = vmul.f32 0.0625, %v1913_v14  ;;  %2508 = vmatpush.bf16.msra.mxu3 %v4092_v16  ;;  %v4430_v14 = vld [vmem:[%s5341_s4 + $0x14] sm:$0xf]  ;;  %v3857_v16 = vld [vmem:[%s5341_s4 + $0x18] sm:$0xf0] }
 0x19d   :  { %2469 = vmatpush.bf16.msra.mxu0 %v3876_v46  ;;  %2483 = vmatpush.bf16.msra.mxu1 %v3940_v54  ;;  %v3860_v37 = vor.u32 %v4430_v14, %v3857_v16  ;;  %v3916_v46 = vor.u32 %v4444_v33, %v3913_v32  ;;  %v1968_v54 = vrot.slane %v1952_v44, 6 }
 0x19e   :  { %v5082_v30 = vadd.f32 1e-05, %v1917_v23  ;;  %2497 = vmatpush.bf16.msra.mxu2 %v4004_v59  ;;  %v3985_v23 = vld [vmem:[%s5341_s4 + $0x118] sm:$0xf0] }
 0x19f   :  { %v3988_v31 = vor.u32 %v4462_v15, %v3985_v23 }
 0x1a0   :  { %4530 = vrsqrt.f32 %v5082_v30  ;;  %2509 = vmatpush.bf16.msra.mxu3 %v4084_v26  ;;  %vm1959_vm11 = vweird.f32 %v5082_v30 }
 0x1a1   :  { %2470 = vmatpush.bf16.msra.mxu0 %v3868_v48  ;;  %2484 = vmatpush.bf16.msra.mxu1 %v3932_v13 }
 0x1a2   :  { %2498 = vmatpush.bf16.msra.mxu2 %v3996_v17 }
 0x1a4   :  { %2510 = vmatpush.bf16.msra.mxu3 %v4076_v43  ;;  %v4041_v43 = vld [vmem:[%s5341_s4 + $0x188] sm:$0xf0] }
 0x1a5   :  { %2471 = vmatpush.bf16.msra.mxu0 %v3860_v37  ;;  %2485 = vmatpush.bf16.msra.mxu1 %v3924_v27  ;;  %v4044_v52 = vor.u32 %v4476_v40, %v4041_v43 }
 0x1a6   :  { %v4531_v7 = vpop.eup %4530  ;;  %2499 = vmatpush.bf16.msra.mxu2 %v3988_v31 }
 0x1a7   :  { %v1954_v12 = vmul.f32 %v4531_v7, %v5082_v30  ;;  %vm1960_vm9 = vweird.f32 %v4531_v7 }
 0x1a8   :  { %2511 = vmatpush.bf16.msra.mxu3 %v4068_v3  ;;  %vm1961_vm12 = vmor %vm1959_vm11, %vm1960_vm9 }
 0x1a9   :  { %v1955_v20 = vmul.f32 %v4531_v7, %v1954_v12  ;;  %2472 = vmatpush.bf16.msra.mxu0 %v3852_v8  ;;  %2486 = vmatpush.bf16.msra.mxu1 %v3916_v46 }
 0x1aa   :  { %2500 = vmatpush.bf16.msra.mxu2 %v3980_v47 }
 0x1ab   :  { %v1956_v26 = vmul.f32 0.5, %v1955_v20 }
 0x1ac   :  { %2512 = vmatpush.bf16.msra.mxu3 %v4060_v21 }
 0x1ad   :  { %v1957_v34 = vsub.f32 1.5, %v1956_v26 }
 0x1af   :  { %v1958_v45 = vmul.f32 %v4531_v7, %v1957_v34 }
 0x1b0   :  { %2513 = vmatpush.bf16.msra.mxu3 %v4052_v35 }
 0x1b1   :  { %v1962_v51 = vsel %vm1961_vm12, %v4531_v7, %v1958_v45  ;;  %v1999_v7 = vperm.slane %v1995_v49, 2 }
 0x1b2   :  { %v1969_v55 = vrot.slane %v1962_v51, 5 }
 0x1b4   :  { %v1973_v30 = vsel %vm1972_vm13, %v1968_v54, %v1969_v55  ;;  %2514 = vmatpush.bf16.msra.mxu3 %v4044_v52 }
 0x1b5   :  { %v1975_v58 = vsel %vm1974_vm14, %v4775_v56, %v1973_v30 }
 0x1b6   :  { %v1977_v59 = vmul.f32 %v1975_v58, %v1918_v53 }
 0x1b8   :  { %v1982_v1 = vperm.slane %v1977_v59, 3  ;;  %v1979_v3 = vperm.slane %v1977_v59, 0  ;;  %v1980_v0 = vperm.slane %v1977_v59, 1  ;;  %v1981_v4 = vperm.slane %v1977_v59, 2 }
 0x1ba   :  { %v1990_v48 = vmul.f32 %v1982_v1, %v4927_v2  ;;  %v1994_v50 = vmul.f32 %v1982_v1, %v4930_v11  ;;  %v1987_v9 = vmul.f32 %v1979_v3, %v4758_v22  ;;  %v1991_v10 = vmul.f32 %v1979_v3, %v4760_v24 }
 0x1bb   :  { %v1988_v56 = vmul.f32 %v1980_v0, %v4766_v62  ;;  %v1992_v12 = vmul.f32 %v1980_v0, %v4768_v63  ;;  %v1989_v13 = vmul.f32 %v1981_v4, %v4777_v6  ;;  %v1993_v14 = vmul.f32 %v1981_v4, %v4779_v57 }
 0x1bc   :  { %v2012_v16 = vadd.f32 %v2000_v60, %v1994_v50  ;;  %v2005_v17 = vadd.f32 %v1997_v61, %v1987_v9  ;;  %v2009_v18 = vadd.f32 %v1997_v61, %v1991_v10  ;;  %v2008_v19 = vadd.f32 %v2000_v60, %v1990_v48 }
 0x1bd   :  { %v2006_v20 = vadd.f32 %v1998_v5, %v1988_v56  ;;  %v2010_v2 = vadd.f32 %v1998_v5, %v1992_v12  ;;  %v2007_v21 = vadd.f32 %v1999_v7, %v1989_v13  ;;  %v2011_v11 = vadd.f32 %v1999_v7, %v1993_v14 }
 0x1be   :  { %v2020_v15 = vmax.f32 %v2012_v16, 0.0  ;;  %v2013_v22 = vmax.f32 %v2005_v17, 0.0  ;;  %v2017_v23 = vmax.f32 %v2009_v18, 0.0  ;;  %v2016_v24 = vmax.f32 %v2008_v19, 0.0  ;;  %v4499_v18 = vld [vmem:[%s5344_s7 + $0x38] sm:$0xff] }
 0x1bf   :  { %v2014_v37 = vmax.f32 %v2006_v20, 0.0  ;;  %v2018_v62 = vmax.f32 %v2010_v2, 0.0  ;;  %v2015_v41 = vmax.f32 %v2007_v21, 0.0  ;;  %v2019_v63 = vmax.f32 %v2011_v11, 0.0  ;;  %v4507_v19 = vld [vmem:[%s5344_s7 + $0x78] sm:$0xff] }
 0x1c0   :  { %v2021_v42 = vpack.c.bf16 %v2017_v23, %v2013_v22  ;;  %v2024_v6 = vpack.c.bf16 %v2020_v15, %v2016_v24  ;;  %v4498_v15 = vld [vmem:[%s5344_s7 + $0x30] sm:$0xff] }
 0x1c1   :  { %v2022_v25 = vpack.c.bf16 %v2018_v62, %v2014_v37  ;;  %v2023_v57 = vpack.c.bf16 %v2019_v63, %v2015_v41  ;;  %v4506_v22 = vld [vmem:[%s5344_s7 + $0x70] sm:$0xff]  ;;  %v4497_v41 = vld [vmem:[%s5344_s7 + $0x28] sm:$0xff] }
 0x1c2   :  { %2417 = vmatmul.bf16.vlgmr.msrb.gmra.mxu0 %v2021_v42  ;;  %2459 = vmatmul.bf16.vlgmr.msrb.gmra.mxu3 %v2024_v6  ;;  %v4505_v63 = vld [vmem:[%s5344_s7 + $0x68] sm:$0xff] }
 0x1c3   :  { %2431 = vmatmul.bf16.vlgmr.msrb.gmra.mxu1 %v2022_v25  ;;  %2445 = vmatmul.bf16.vlgmr.msrb.gmra.mxu2 %v2023_v57 }
 0x1c4   :  { %2743 = vmatpush.bf16.msrb.mxu0 %v4499_v18  ;;  %2757 = vmatpush.bf16.msrb.mxu1 %v4507_v19 }
 0x1c8   :  { %2744 = vmatpush.bf16.msrb.mxu0 %v4498_v15  ;;  %2758 = vmatpush.bf16.msrb.mxu1 %v4506_v22 }
 0x1cc   :  { %2745 = vmatpush.bf16.msrb.mxu0 %v4497_v41  ;;  %2759 = vmatpush.bf16.msrb.mxu1 %v4505_v63 }
 0x1d2   :  { %2473 = vmatmul.bf16.vlgmr.msra.gmra.mxu0 %v2021_v42  ;;  %2515 = vmatmul.bf16.vlgmr.msra.gmra.mxu3 %v2024_v6 }
 0x1d3   :  { %2487 = vmatmul.bf16.vlgmr.msra.gmra.mxu1 %v2022_v25  ;;  %2501 = vmatmul.bf16.vlgmr.msra.gmra.mxu2 %v2023_v57 }
 0x23f   :  { %v2418_v26 = vpop.f32.mrf.mxu0 }
 0x240   :  { %v2432_v27 = vpop.f32.mrf.mxu1 }
 0x241   :  { %v2433_v32 = vadd.f32 %v2432_v27, %v2418_v26  ;;  %v4496_v27 = vld [vmem:[%s5344_s7 + $0x20] sm:$0xff] }
 0x242   :  { %2746 = vmatpush.bf16.msrb.mxu0 %v4496_v27 }
 0x245   :  { %v2460_v28 = vpop.f32.mrf.mxu3 }
 0x246   :  { %v2446_v29 = vpop.f32.mrf.mxu2 }
 0x247   :  { %v2420_v31 = vpop.f32.mrf.mxu0  ;;  %v2447_v34 = vadd.f32 %v2446_v29, %v2433_v32  ;;  %v4495_v32 = vld [vmem:[%s5344_s7 + $0x18] sm:$0xff] }
 0x248   :  { %v2434_v33 = vpop.f32.mrf.mxu1  ;;  %2747 = vmatpush.bf16.msrb.mxu0 %v4495_v32  ;;  %v4514_v32 = vld [vmem:[%s5347_s10 + $0x30] sm:$0xff] }
 0x249   :  { %v2435_v35 = vadd.f32 %v2434_v33, %v2420_v31  ;;  %v2461_v43 = vadd.f32 %v2460_v28, %v2447_v34  ;;  %v4504_v28 = vld [vmem:[%s5344_s7 + $0x60] sm:$0xff]  ;;  %v4503_v34 = vld [vmem:[%s5344_s7 + $0x58] sm:$0xff] }
 0x24a   :  { %2760 = vmatpush.bf16.msrb.mxu1 %v4504_v28 }
 0x24d   :  { %v2462_v36 = vpop.f32.mrf.mxu3 }
 0x24e   :  { %v2448_v38 = vpop.f32.mrf.mxu2  ;;  %2761 = vmatpush.bf16.msrb.mxu1 %v4503_v34 }
 0x24f   :  { %v2449_v39 = vadd.f32 %v2448_v38, %v2435_v35  ;;  %v2474_v8 = vpop.f32.mrf.mxu0 }
 0x250   :  { %v2488_v40 = vpop.f32.mrf.mxu1 }
 0x251   :  { %v2463_v44 = vadd.f32 %v2462_v36, %v2449_v39  ;;  %v2489_v49 = vadd.f32 %v2488_v40, %v2474_v8  ;;  %v4494_v39 = vld [vmem:[%s5344_s7 + $0x10] sm:$0xff] }
 0x252   :  { %v4502_v8 = vld [vmem:[%s5344_s7 + $0x50] sm:$0xff]  ;;  %2748 = vmatpush.bf16.msrb.mxu0 %v4494_v39 }
 0x253   :  { %v2521_v45 = vadd.f32 %v2463_v44, %v2461_v43  ;;  %2762 = vmatpush.bf16.msrb.mxu1 %v4502_v8  ;;  %v4512_v8 = vld [vmem:[%s5347_s10 + $0x20] sm:$0xff] }
 0x255   :  { %v2522_v46 = vrot.slane %v2521_v45, 4  ;;  %v2516_v51 = vpop.f32.mrf.mxu3 }
 0x256   :  { %v2502_v47 = vpop.f32.mrf.mxu2 }
 0x257   :  { %v2523_v52 = vadd.f32 %v2522_v46, %v2521_v45  ;;  %v2476_v55 = vpop.f32.mrf.mxu0  ;;  %v2503_v59 = vadd.f32 %v2502_v47, %v2489_v49  ;;  %v4501_v45 = vld [vmem:[%s5344_s7 + $0x48] sm:$0xff] }
 0x258   :  { %v2490_v53 = vpop.f32.mrf.mxu1  ;;  %2763 = vmatpush.bf16.msrb.mxu1 %v4501_v45 }
 0x259   :  { %v2524_v54 = vrot.slane %v2523_v52, 2  ;;  %v2491_v60 = vadd.f32 %v2490_v53, %v2476_v55  ;;  %v2517_v5 = vadd.f32 %v2516_v51, %v2503_v59 }
 0x25b   :  { %v2525_v30 = vadd.f32 %v2524_v54, %v2523_v52  ;;  %v4492_v52 = vld [vmem:[%s5344_s7] sm:$0xff] }
 0x25c   :  { %v4500_v54 = vld [vmem:[%s5344_s7 + $0x40] sm:$0xff] }
 0x25d   :  { %v2526_v58 = vrot.slane %v2525_v30, 1  ;;  %v2518_v0 = vpop.f32.mrf.mxu3  ;;  %2764 = vmatpush.bf16.msrb.mxu1 %v4500_v54 }
 0x25e   :  { %v2504_v61 = vpop.f32.mrf.mxu2 }
 0x25f   :  { %v2527_v1 = vadd.f32 %v2526_v58, %v2525_v30  ;;  %v2505_v3 = vadd.f32 %v2504_v61, %v2491_v60 }
 0x261   :  { %v2535_v4 = vmul.f32 0.0625, %v2527_v1  ;;  %v2519_v7 = vadd.f32 %v2518_v0, %v2505_v3 }
 0x263   :  { %v5226_v48 = vsub.f32 %v2461_v43, %v2535_v4  ;;  %v5228_v50 = vsub.f32 %v2463_v44, %v2535_v4  ;;  %v2528_v9 = vadd.f32 %v2519_v7, %v2517_v5  ;;  %v4493_v44 = vld [vmem:[%s5344_s7 + $0x8] sm:$0xff] }
 0x264   :  { %2749 = vmatpush.bf16.msrb.mxu0 %v4493_v44 }
 0x265   :  { %v2541_v10 = vmul.f32 %v5226_v48, %v5226_v48  ;;  %v2543_v56 = vmul.f32 %v5228_v50, %v5228_v50  ;;  %v2529_v12 = vrot.slane %v2528_v9, 4 }
 0x267   :  { %v2545_v13 = vadd.f32 %v2543_v56, %v2541_v10  ;;  %v2530_v14 = vadd.f32 %v2529_v12, %v2528_v9  ;;  %v2599_v12 = vld [vmem:[%s5343_s6] sm:$0x3] }
 0x268   :  { %2750 = vmatpush.bf16.msrb.mxu0 %v4492_v52  ;;  %v2602_v18 = vperm.slane %v2599_v12, 1  ;;  %v4510_v52 = vld [vmem:[%s5347_s10 + $0x10] sm:$0xff] }
 0x269   :  { %v2546_v16 = vrot.slane %v2545_v13, 4  ;;  %v2531_v17 = vrot.slane %v2530_v14, 2 }
 0x26b   :  { %v2547_v20 = vadd.f32 %v2546_v16, %v2545_v13  ;;  %v2532_v2 = vadd.f32 %v2531_v17, %v2530_v14  ;;  %v2601_v17 = vperm.slane %v2599_v12, 0 }
 0x26d   :  { %v2548_v21 = vrot.slane %v2547_v20, 2  ;;  %v2533_v11 = vrot.slane %v2532_v2, 1 }
 0x26f   :  { %v2549_v23 = vadd.f32 %v2548_v21, %v2547_v20  ;;  %v2534_v24 = vadd.f32 %v2533_v11, %v2532_v2 }
 0x271   :  { %v2550_v37 = vrot.slane %v2549_v23, 1  ;;  %v2536_v62 = vmul.f32 0.0625, %v2534_v24 }
 0x273   :  { %v2551_v42 = vadd.f32 %v2550_v37, %v2549_v23  ;;  %v5252_v6 = vsub.f32 %v2517_v5, %v2536_v62  ;;  %v5254_v25 = vsub.f32 %v2519_v7, %v2536_v62  ;;  %v2561_v7 = vld [vmem:[%s5342_s5] sm:$0x3] }
 0x275   :  { %v2542_v57 = vmul.f32 %v5252_v6, %v5252_v6  ;;  %v2544_v26 = vmul.f32 %v5254_v25, %v5254_v25  ;;  %v2559_v29 = vmul.f32 0.0625, %v2551_v42 }
 0x277   :  { %v2552_v31 = vadd.f32 %v2544_v26, %v2542_v57  ;;  %v2562_v35 = vadd.f32 1e-05, %v2559_v29  ;;  %v4515_v29 = vld [vmem:[%s5347_s10 + $0x38] sm:$0xff] }
 0x278   :  { %2886 = vmatpush.bf16.msrb.mxu2 %v4515_v29 }
 0x279   :  { %v2553_v33 = vrot.slane %v2552_v31, 4  ;;  %4532 = vrsqrt.f32 %v2562_v35  ;;  %vm2570_vm3 = vweird.f32 %v2562_v35 }
 0x27b   :  { %v2554_v36 = vadd.f32 %v2553_v33, %v2552_v31 }
 0x27c   :  { %2887 = vmatpush.bf16.msrb.mxu2 %v4514_v32 }
 0x27d   :  { %v2555_v38 = vrot.slane %v2554_v36, 2 }
 0x27f   :  { %v2556_v40 = vadd.f32 %v2555_v38, %v2554_v36  ;;  %v4533_v47 = vpop.eup %4532  ;;  %v4513_v36 = vld [vmem:[%s5347_s10 + $0x28] sm:$0xff] }
 0x280   :  { %v2565_v53 = vmul.f32 %v4533_v47, %v2562_v35  ;;  %vm2571_vm0 = vweird.f32 %v4533_v47  ;;  %2888 = vmatpush.bf16.msrb.mxu2 %v4513_v36 }
 0x281   :  { %v2557_v43 = vrot.slane %v2556_v40, 1  ;;  %vm2572_vm4 = vmor %vm2570_vm3, %vm2571_vm0 }
 0x282   :  { %v2566_v30 = vmul.f32 %v4533_v47, %v2565_v53  ;;  %v4509_v53 = vld [vmem:[%s5347_s10 + $0x8] sm:$0xff] }
 0x283   :  { %v2558_v46 = vadd.f32 %v2557_v43, %v2556_v40 }
 0x284   :  { %v2567_v58 = vmul.f32 0.5, %v2566_v30  ;;  %2889 = vmatpush.bf16.msrb.mxu2 %v4512_v8 }
 0x285   :  { %v2560_v51 = vmul.f32 0.0625, %v2558_v46  ;;  %v4511_v46 = vld [vmem:[%s5347_s10 + $0x18] sm:$0xff] }
 0x286   :  { %v2568_v61 = vsub.f32 1.5, %v2567_v58  ;;  %v4508_v58 = vld [vmem:[%s5347_s10] sm:$0xff] }
 0x287   :  { %v2563_v55 = vadd.f32 1e-05, %v2560_v51 }
 0x288   :  { %v2569_v0 = vmul.f32 %v4533_v47, %v2568_v61  ;;  %2890 = vmatpush.bf16.msrb.mxu2 %v4511_v46 }
 0x289   :  { %4534 = vrsqrt.f32 %v2563_v55  ;;  %vm2580_vm1 = vweird.f32 %v2563_v55 }
 0x28a   :  { %v2573_v10 = vsel %vm2572_vm4, %v4533_v47, %v2569_v0 }
 0x28c   :  { %2891 = vmatpush.bf16.msrb.mxu2 %v4510_v52 }
 0x28f   :  { %v4535_v49 = vpop.eup %4534 }
 0x290   :  { %v2575_v59 = vmul.f32 %v4535_v49, %v2563_v55  ;;  %vm2581_vm15 = vweird.f32 %v4535_v49  ;;  %2892 = vmatpush.bf16.msrb.mxu2 %v4509_v53 }
 0x291   :  { %vm2582_vm2 = vmor %vm2580_vm1, %vm2581_vm15 }
 0x292   :  { %v2576_v60 = vmul.f32 %v4535_v49, %v2575_v59 }
 0x294   :  { %v2577_v1 = vmul.f32 0.5, %v2576_v60  ;;  %2893 = vmatpush.bf16.msrb.mxu2 %v4508_v58 }
 0x296   :  { %v2578_v3 = vsub.f32 1.5, %v2577_v1 }
 0x298   :  { %v2579_v4 = vmul.f32 %v4535_v49, %v2578_v3 }
 0x29a   :  { %v2583_v5 = vsel %vm2582_vm2, %v4535_v49, %v2579_v4 }
 0x29b   :  { %v2586_v9 = vrot.slane %v2583_v5, 7 }
 0x29d   :  { %v2587_v56 = vsel %vm1970_vm5, %v2573_v10, %v2586_v9 }
 0x29e   :  { %v2589_v13 = vmul.f32 %v2587_v56, %v2561_v7  ;;  %v2791_v7 = vld [vmem:[%s5345_s8] sm:$0x1] }
 0x2a0   :  { %v2591_v14 = vperm.slane %v2589_v13, 0  ;;  %v2592_v16 = vperm.slane %v2589_v13, 1  ;;  %v4522_v13 = vld [vmem:[%s5346_s9] ss:$0 sm:$0xff]  ;;  %s2908_s9 = sshll.u32 %s5349_s12, 4  ;;  %s2909_s9 = int_to_ptr.hbm [resolvable:$true] %s2908_s9 }
 0x2a2   :  { %v2596_v19 = vmul.f32 %v2592_v16, %v5252_v6  ;;  %v2598_v20 = vmul.f32 %v2592_v16, %v5254_v25  ;;  %v2595_v2 = vmul.f32 %v2591_v14, %v5226_v48  ;;  %v2597_v21 = vmul.f32 %v2591_v14, %v5228_v50 }
 0x2a4   :  { %v2608_v11 = vadd.f32 %v2602_v18, %v2598_v20  ;;  %v2605_v15 = vadd.f32 %v2601_v17, %v2595_v2  ;;  %v2607_v22 = vadd.f32 %v2601_v17, %v2597_v21  ;;  %v2606_v23 = vadd.f32 %v2602_v18, %v2596_v19  ;;  %v4523_v21 = vld [vmem:[%s5348_s11] ss:$0 sm:$0xff] }
 0x2a6   :  { %v2612_v24 = vmax.f32 %v2608_v11, 0.0  ;;  %v2609_v37 = vmax.f32 %v2605_v15, 0.0  ;;  %v2611_v62 = vmax.f32 %v2607_v22, 0.0  ;;  %v2610_v41 = vmax.f32 %v2606_v23, 0.0 }
 0x2a8   :  { %v2613_v63 = vpack.c.bf16 %v2611_v62, %v2609_v37  ;;  %v2614_v42 = vpack.c.bf16 %v2612_v24, %v2610_v41 }
 0x2aa   :  { %2751 = vmatmul.bf16.vlgmr.msrb.gmra.mxu0 %v2613_v63  ;;  %2765 = vmatmul.bf16.vlgmr.msrb.gmra.mxu1 %v2614_v42 }
 0x327   :  { %v2752_v57 = vpop.f32.mrf.mxu0  ;;  %v2766_v6 = vpop.f32.mrf.mxu1 }
 0x328   :  { %v2767_v27 = vadd.f32 %v2766_v6, %v2752_v57 }
 0x32f   :  { %v2754_v26 = vpop.f32.mrf.mxu0  ;;  %v2768_v25 = vpop.f32.mrf.mxu1 }
 0x330   :  { %v2769_v48 = vadd.f32 %v2768_v25, %v2754_v26 }
 0x332   :  { %v2771_v28 = vadd.f32 %v2769_v48, %v2767_v27 }
 0x334   :  { %v2772_v50 = vrot.slane %v2771_v28, 4 }
 0x336   :  { %v2773_v31 = vadd.f32 %v2772_v50, %v2771_v28 }
 0x338   :  { %v2774_v33 = vrot.slane %v2773_v31, 2 }
 0x33a   :  { %v2775_v34 = vadd.f32 %v2774_v33, %v2773_v31 }
 0x33c   :  { %v2776_v35 = vrot.slane %v2775_v34, 1 }
 0x33e   :  { %v2777_v38 = vadd.f32 %v2776_v35, %v2775_v34 }
 0x340   :  { %v2778_v39 = vmul.f32 0.0625, %v2777_v38 }
 0x342   :  { %v2779_v40 = vsub.f32 %v2767_v27, %v2778_v39  ;;  %v2780_v43 = vsub.f32 %v2769_v48, %v2778_v39 }
 0x344   :  { %v2781_v44 = vmul.f32 %v2779_v40, %v2779_v40  ;;  %v2782_v45 = vmul.f32 %v2780_v43, %v2780_v43 }
 0x346   :  { %v2783_v47 = vadd.f32 %v2782_v45, %v2781_v44 }
 0x348   :  { %v2784_v51 = vrot.slane %v2783_v47, 4 }
 0x34a   :  { %v2785_v54 = vadd.f32 %v2784_v51, %v2783_v47 }
 0x34c   :  { %v2786_v55 = vrot.slane %v2785_v54, 2 }
 0x34e   :  { %v2787_v30 = vadd.f32 %v2786_v55, %v2785_v54 }
 0x350   :  { %v2788_v49 = vrot.slane %v2787_v30, 1 }
 0x352   :  { %v2789_v59 = vadd.f32 %v2788_v49, %v2787_v30 }
 0x354   :  { %v2790_v60 = vmul.f32 0.0625, %v2789_v59 }
 0x356   :  { %v2792_v61 = vadd.f32 1e-05, %v2790_v60 }
 0x358   :  { %4536 = vrsqrt.f32 %v2792_v61  ;;  %vm2799_vm6 = vweird.f32 %v2792_v61 }
 0x35e   :  { %v4537_v1 = vpop.eup %4536 }
 0x35f   :  { %v2794_v3 = vmul.f32 %v4537_v1, %v2792_v61  ;;  %vm2800_vm5 = vweird.f32 %v4537_v1 }
 0x360   :  { %vm2801_vm7 = vmor %vm2799_vm6, %vm2800_vm5 }
 0x361   :  { %v2795_v0 = vmul.f32 %v4537_v1, %v2794_v3 }
 0x363   :  { %v2796_v4 = vmul.f32 0.5, %v2795_v0 }
 0x365   :  { %v2797_v5 = vsub.f32 1.5, %v2796_v4 }
 0x367   :  { %v2798_v9 = vmul.f32 %v4537_v1, %v2797_v5 }
 0x369   :  { %v2802_v10 = vsel %vm2801_vm7, %v4537_v1, %v2798_v9 }
 0x36a   :  { %v2803_v56 = vmul.f32 %v2802_v10, %v2791_v7 }
 0x36c   :  { %v2805_v12 = vperm.slane %v2803_v56, 0 }
 0x36e   :  { %v2807_v14 = vmul.f32 %v2805_v12, %v2779_v40  ;;  %v2808_v16 = vmul.f32 %v2805_v12, %v2780_v43 }
 0x370   :  { %v2814_v17 = vadd.f32 %v4522_v13, %v2808_v16  ;;  %v2813_v18 = vadd.f32 %v4522_v13, %v2807_v14 }
 0x372   :  { %v2816_v19 = vmax.f32 %v2814_v17, 0.0  ;;  %v2815_v20 = vmax.f32 %v2813_v18, 0.0 }
 0x374   :  { %v2817_v2 = vpack.c.bf16 %v2816_v19, %v2815_v20 }
 0x376   :  { %2894 = vmatmul.bf16.vlgmr.msrb.gmra.mxu2 %v2817_v2 }
 0x3f9   :  { %v2895_v11 = vpop.f32.mrf.mxu2 }
 0x3fa   :  { %v2896_v15 = vadd.f32 %v4523_v21, %v2895_v11 }
 0x3fc   :  { %2900 = vst [vmem:[#allocation5] sm:$0xff] %v2896_v15 }
 0x401   :  { %v2897_v22 = vpop.f32.mrf.mxu2 }
 0x402   :  { %v2898_v23 = vadd.f32 %v4523_v21, %v2897_v22 }
 0x404   :  { %2901 = vst [vmem:[#allocation5 + $0x8] sm:$0xff] %v2898_v23 }
 0x405   :  { %2914 = dma.vmem_to_hbm [thread:$0]  %s2907_s22, 256, %s2909_s9, [#allocation4], %s4594_s24, %s4594_s24, %s4595_s25  }
 0x406   :  { %4588 = dma.done.wait [#allocation4], 256  }
 0x407   :  { %4589 = vsyncadd [#allocation4], 4294967040 }
 0x408   :  { %2919 = vsyncpa [#allocation3], 1 }
 0x409   :  { %2920 = vsyncpa [#allocation4], 1 }

</bundles_post_ra>
